<compile_context>
chip_gen: v6e
topology: v6e:2x2x1
jax: 0.10.0
libtpu: 0.0.40
codegen_flags: <defaults>
</compile_context>

<pallas_src>
import functools

import jax
import jax.numpy as jnp
from jax import lax
from jax.experimental import pallas as pl
from jax.experimental.pallas import tpu as pltpu

LN_EPS = 1e-5                       # torch.nn.LayerNorm default
_VMEM_LIMIT = 64 * 1024 * 1024      # raise scoped VMEM (default 16/32 MiB)


# --------------------------------------------------------------------------- #
# Small helpers
# --------------------------------------------------------------------------- #
def _cparams():
    return pltpu.CompilerParams(dimension_semantics=("parallel",),
                                vmem_limit_bytes=_VMEM_LIMIT)


def _rep_spec(shape):
    """Whole-array block, reused (resident) across every grid step."""
    nd = len(shape)
    return pl.BlockSpec(shape, lambda i, _nd=nd: (0,) * _nd)


def _row_tile(n, cap=512):
    """Largest row tile <= cap that divides n and is a multiple of 8 (sublane),
    else the full extent (always a legal block)."""
    best = None
    for d in range(8, min(n, cap) + 1, 8):
        if n % d == 0:
            best = d
    return best if best is not None else n


def _batch_tile(b, cap=8):
    """Largest divisor of b that is <= cap (batch elements per attention step)."""
    for d in range(min(b, cap), 0, -1):
        if b % d == 0:
            return d
    return 1


def _layernorm(y, g, b):
    mean = jnp.mean(y, axis=-1, keepdims=True)
    cen = y - mean
    var = jnp.mean(cen * cen, axis=-1, keepdims=True)
    return cen * lax.rsqrt(var + LN_EPS) * g + b


# --------------------------------------------------------------------------- #
# Kernels
# --------------------------------------------------------------------------- #
def _proj_kvq_kernel(x_ref, wkT_ref, bk_ref, wvT_ref, bv_ref, wqT_ref, bq_ref,
                     k_ref, v_ref, q_ref):
    # Self-attention projections: key == value == query -> one input DMA,
    # three matmuls.  x: (rows, M); weights pre-transposed to (M, HD).
    x = x_ref[...]
    k = jnp.dot(x, wkT_ref[...], preferred_element_type=jnp.float32) + bk_ref[...]
    v = jnp.dot(x, wvT_ref[...], preferred_element_type=jnp.float32) + bv_ref[...]
    q = jnp.dot(x, wqT_ref[...], preferred_element_type=jnp.float32) + bq_ref[...]
    k_ref[...] = k.astype(k_ref.dtype)
    v_ref[...] = v.astype(v_ref.dtype)
    q_ref[...] = q.astype(q_ref.dtype)


def _proj_kv_q_kernel(kv_ref, q_ref, wkT_ref, bk_ref, wvT_ref, bv_ref,
                      wqT_ref, bq_ref, k_ref, v_ref, q_out_ref):
    # Cross-attention projections: key == value != query -> two input DMAs.
    kv = kv_ref[...]
    k = jnp.dot(kv, wkT_ref[...], preferred_element_type=jnp.float32) + bk_ref[...]
    v = jnp.dot(kv, wvT_ref[...], preferred_element_type=jnp.float32) + bv_ref[...]
    q = jnp.dot(q_ref[...], wqT_ref[...], preferred_element_type=jnp.float32) + bq_ref[...]
    k_ref[...] = k.astype(k_ref.dtype)
    v_ref[...] = v.astype(v_ref.dtype)
    q_out_ref[...] = q.astype(q_out_ref.dtype)


def _linear_kernel(x_ref, wT_ref, b_ref, y_ref):
    y = jnp.dot(x_ref[...], wT_ref[...],
                preferred_element_type=jnp.float32) + b_ref[...]
    y_ref[...] = y.astype(y_ref.dtype)


def _attention_kernel(q_ref, k_ref, v_ref, ctx_ref, attn_ref, *, scale):
    # q: (bt*H, Lq, D), k/v: (bt*H, Lk, D) -- all heads of `bt` batch elements.
    q = q_ref[...]
    k = k_ref[...]
    v = v_ref[...]
    scores = jnp.einsum('hqd,hkd->hqk', q, k,
                        preferred_element_type=jnp.float32)
    if scale:  # mirrors the PyTorch `if scale:` truthiness check (static)
        scores = scores * scale
    # Stable softmax over the last dim (torch Softmax(dim=2)).
    m = jnp.max(scores, axis=-1, keepdims=True)
    e = jnp.exp(scores - m)
    s = jnp.sum(e, axis=-1, keepdims=True)
    # Exact reciprocal (approx=False) keeps bit-level parity with the reference.
    attn = e * pl.reciprocal(s, approx=False)
    attn_ref[...] = attn.astype(attn_ref.dtype)
    ctx = jnp.einsum('hqk,hkd->hqd', attn, v,
                     preferred_element_type=jnp.float32)
    ctx_ref[...] = ctx.astype(ctx_ref.dtype)


def _out_proj_ln_kernel(ctx_ref, res_ref, wfT_ref, bf_ref, g_ref, b_ref,
                        out_ref):
    # ctx: (rows, HD), res: (rows, M), wfT: (HD, M)
    proj = jnp.dot(ctx_ref[...], wfT_ref[...],
                   preferred_element_type=jnp.float32) + bf_ref[...]
    y = res_ref[...].astype(jnp.float32) + proj      # dropout == identity (eval)
    out_ref[...] = _layernorm(y, g_ref[...], b_ref[...]).astype(out_ref.dtype)


def _out_proj_ln_ffn_kernel(ctx_ref, res_ref, wfT_ref, bf_ref, g1_ref, b1_ref,
                            w1T_ref, fb1_ref, w2T_ref, fb2_ref, g2_ref, b2_ref,
                            out_ref):
    # Fused: final linear + residual + LN  ->  conv1d(k=1) -> ReLU -> conv1d(k=1)
    #        + residual + LN.  Removes one (B, L, M) HBM round trip.
    proj = jnp.dot(ctx_ref[...], wfT_ref[...],
                   preferred_element_type=jnp.float32) + bf_ref[...]
    x = _layernorm(res_ref[...].astype(jnp.float32) + proj,
                   g1_ref[...], b1_ref[...])
    h = jnp.dot(x, w1T_ref[...], preferred_element_type=jnp.float32) + fb1_ref[...]
    h = jnp.maximum(h, 0.0)
    y = jnp.dot(h, w2T_ref[...], preferred_element_type=jnp.float32) + fb2_ref[...]
    z = x + y                                        # dropout == identity (eval)
    out_ref[...] = _layernorm(z, g2_ref[...], b2_ref[...]).astype(out_ref.dtype)


# --------------------------------------------------------------------------- #
# Pallas wrappers (all per-position kernels work on 2-D (B*L, feat) views)
# --------------------------------------------------------------------------- #
def _proj_kvq(x2d, p):
    N, M = x2d.shape
    HD = p['wkT'].shape[1]
    t = _row_tile(N)
    in_row = pl.BlockSpec((t, M), lambda i: (i, 0))
    out_row = pl.BlockSpec((t, HD), lambda i: (i, 0))
    return pl.pallas_call(
        _proj_kvq_kernel,
        out_shape=tuple(jax.ShapeDtypeStruct((N, HD), x2d.dtype)
                        for _ in range(3)),
        grid_spec=pltpu.PrefetchScalarGridSpec(
            num_scalar_prefetch=0, grid=(N // t,),
            in_specs=[in_row,
                      _rep_spec((M, HD)), _rep_spec((1, HD)),
                      _rep_spec((M, HD)), _rep_spec((1, HD)),
                      _rep_spec((M, HD)), _rep_spec((1, HD))],
            out_specs=(out_row, out_row, out_row)),
        compiler_params=_cparams(),
    )(x2d, p['wkT'], p['bk'], p['wvT'], p['bv'], p['wqT'], p['bq'])


def _proj_kv_q(kv2d, q2d, p):
    N, M = kv2d.shape
    HD = p['wkT'].shape[1]
    t = _row_tile(N)
    in_row = pl.BlockSpec((t, M), lambda i: (i, 0))
    out_row = pl.BlockSpec((t, HD), lambda i: (i, 0))
    return pl.pallas_call(
        _proj_kv_q_kernel,
        out_shape=tuple(jax.ShapeDtypeStruct((N, HD), kv2d.dtype)
                        for _ in range(3)),
        grid_spec=pltpu.PrefetchScalarGridSpec(
            num_scalar_prefetch=0, grid=(N // t,),
            in_specs=[in_row, in_row,
                      _rep_spec((M, HD)), _rep_spec((1, HD)),
                      _rep_spec((M, HD)), _rep_spec((1, HD)),
                      _rep_spec((M, HD)), _rep_spec((1, HD))],
            out_specs=(out_row, out_row, out_row)),
        compiler_params=_cparams(),
    )(kv2d, q2d, p['wkT'], p['bk'], p['wvT'], p['bv'], p['wqT'], p['bq'])


def _linear(x2d, wT, b):
    N, M = x2d.shape
    O = wT.shape[1]
    t = _row_tile(N)
    return pl.pallas_call(
        _linear_kernel,
        out_shape=jax.ShapeDtypeStruct((N, O), x2d.dtype),
        grid_spec=pltpu.PrefetchScalarGridSpec(
            num_scalar_prefetch=0, grid=(N // t,),
            in_specs=[pl.BlockSpec((t, M), lambda i: (i, 0)),
                      _rep_spec((M, O)), _rep_spec((1, O))],
            out_specs=pl.BlockSpec((t, O), lambda i: (i, 0))),
        compiler_params=_cparams(),
    )(x2d, wT, b)


def _scaled_dot_product_attention(q_h, k_h, v_h, num_heads, scale):
    BH, Lq, D = q_h.shape
    Lk = k_h.shape[1]
    B = BH // num_heads
    bt = _batch_tile(B)            # batch elements per grid step
    Hb = bt * num_heads
    kernel = functools.partial(_attention_kernel, scale=scale)
    return pl.pallas_call(
        kernel,
        out_shape=(jax.ShapeDtypeStruct((BH, Lq, D), q_h.dtype),
                   jax.ShapeDtypeStruct((BH, Lq, Lk), jnp.float32)),
        grid_spec=pltpu.PrefetchScalarGridSpec(
            num_scalar_prefetch=0, grid=(B // bt,),
            in_specs=[pl.BlockSpec((Hb, Lq, D), lambda b: (b, 0, 0)),
                      pl.BlockSpec((Hb, Lk, D), lambda b: (b, 0, 0)),
                      pl.BlockSpec((Hb, Lk, D), lambda b: (b, 0, 0))],
            out_specs=(pl.BlockSpec((Hb, Lq, D), lambda b: (b, 0, 0)),
                       pl.BlockSpec((Hb, Lq, Lk), lambda b: (b, 0, 0)))),
        compiler_params=_cparams(),
    )(q_h, k_h, v_h)


def _out_proj_layernorm(ctx2d, res2d, p):
    N, HD = ctx2d.shape
    M = res2d.shape[1]
    t = _row_tile(N)
    return pl.pallas_call(
        _out_proj_ln_kernel,
        out_shape=jax.ShapeDtypeStruct((N, M), res2d.dtype),
        grid_spec=pltpu.PrefetchScalarGridSpec(
            num_scalar_prefetch=0, grid=(N // t,),
            in_specs=[pl.BlockSpec((t, HD), lambda i: (i, 0)),
                      pl.BlockSpec((t, M), lambda i: (i, 0)),
                      _rep_spec((HD, M)), _rep_spec((1, M)),
                      _rep_spec((1, M)), _rep_spec((1, M))],
            out_specs=pl.BlockSpec((t, M), lambda i: (i, 0))),
        compiler_params=_cparams(),
    )(ctx2d, res2d, p['wfT'], p['bf'], p['ln_g'], p['ln_b'])


def _out_proj_ln_ffn(ctx2d, res2d, p, fp):
    N, HD = ctx2d.shape
    M = res2d.shape[1]
    F = fp['w1T'].shape[1]
    t = _row_tile(N)
    return pl.pallas_call(
        _out_proj_ln_ffn_kernel,
        out_shape=jax.ShapeDtypeStruct((N, M), res2d.dtype),
        grid_spec=pltpu.PrefetchScalarGridSpec(
            num_scalar_prefetch=0, grid=(N // t,),
            in_specs=[pl.BlockSpec((t, HD), lambda i: (i, 0)),
                      pl.BlockSpec((t, M), lambda i: (i, 0)),
                      _rep_spec((HD, M)), _rep_spec((1, M)),
                      _rep_spec((1, M)), _rep_spec((1, M)),
                      _rep_spec((M, F)), _rep_spec((1, F)),
                      _rep_spec((F, M)), _rep_spec((1, M)),
                      _rep_spec((1, M)), _rep_spec((1, M))],
            out_specs=pl.BlockSpec((t, M), lambda i: (i, 0))),
        compiler_params=_cparams(),
    )(ctx2d, res2d, p['wfT'], p['bf'], p['ln_g'], p['ln_b'],
      fp['w1T'], fp['b1'], fp['w2T'], fp['b2'], fp['ln_g'], fp['ln_b'])


# --------------------------------------------------------------------------- #
# Parameter preparation (done ONCE, outside the jitted forward)
# --------------------------------------------------------------------------- #
def prepare_attn_params(raw):
    HD, M = raw['wk'].shape
    return {
        'wkT': jnp.asarray(raw['wk']).T, 'bk': jnp.asarray(raw['bk']).reshape(1, HD),
        'wvT': jnp.asarray(raw['wv']).T, 'bv': jnp.asarray(raw['bv']).reshape(1, HD),
        'wqT': jnp.asarray(raw['wq']).T, 'bq': jnp.asarray(raw['bq']).reshape(1, HD),
        'wfT': jnp.asarray(raw['wf']).T, 'bf': jnp.asarray(raw['bf']).reshape(1, M),
        'ln_g': jnp.asarray(raw['ln_g']).reshape(1, M),
        'ln_b': jnp.asarray(raw['ln_b']).reshape(1, M),
    }


def prepare_ffn_params(raw):
    F, M = raw['w1'].shape
    return {
        'w1T': jnp.asarray(raw['w1']).T, 'b1': jnp.asarray(raw['b1']).reshape(1, F),
        'w2T': jnp.asarray(raw['w2']).T, 'b2': jnp.asarray(raw['b2']).reshape(1, M),
        'ln_g': jnp.asarray(raw['ln_g']).reshape(1, M),
        'ln_b': jnp.asarray(raw['ln_b']).reshape(1, M),
    }


# --------------------------------------------------------------------------- #
# Module-level forward
# --------------------------------------------------------------------------- #
def multi_head_attention(key, value, query, p, num_heads, ffn_params=None):
    """Exact port of MultiHeadAttention.forward (eval mode, attn_mask=None).

    If `ffn_params` is given, the PositionalWiseFeedForward that follows in the
    DecoderLayer is fused into the output-projection epilogue kernel.
    """
    B, Lk, M = key.shape
    Lq = query.shape[1]
    dim_per_head = M // num_heads
    HD = dim_per_head * num_heads

    key2 = key.reshape(B * Lk, M)
    query2 = query.reshape(B * Lq, M)

    if (key is value) and (key is query):
        # Self-attention: one input DMA feeds all three projections.
        k2, v2, q2 = _proj_kvq(key2, p)
    elif (key is value) and (Lk == Lq):
        # Cross-attention (key == value): two input DMAs, one kernel.
        k2, v2, q2 = _proj_kv_q(key2, query2, p)
    else:
        value2 = value.reshape(B * value.shape[1], M)
        k2 = _linear(key2, p['wkT'], p['bk'])
        v2 = _linear(value2, p['wvT'], p['bv'])
        q2 = _linear(query2, p['wqT'], p['bq'])

    # Exact torch `.view(B*H, -1, dph)` semantics: raw C-order reshape of
    # contiguous buffers (NOT a per-head feature split) -- done outside kernels.
    k_h = k2.reshape(B * num_heads, -1, dim_per_head)
    v_h = v2.reshape(B * num_heads, -1, dim_per_head)
    q_h = q2.reshape(B * num_heads, -1, dim_per_head)

    # Exact torch expression: (key.size(-1) // num_heads) ** (-0.5)
    scale = (dim_per_head // num_heads) ** (-0.5)

    ctx_h, attention = _scaled_dot_product_attention(q_h, k_h, v_h,
                                                     num_heads, scale)

    ctx2 = ctx_h.reshape(B * Lq, HD)   # == torch context.view(B, -1, HD), flat
    if ffn_params is None:
        out2 = _out_proj_layernorm(ctx2, query2, p)
    else:
        out2 = _out_proj_ln_ffn(ctx2, query2, p, ffn_params)
    return out2.reshape(B, Lq, M), attention


def decoder_layer(dec_inputs, enc_outputs, attn_params, ffn_params, num_heads):
    """DecoderLayer.forward with self_attn_mask=None, context_attn_mask=None."""
    # TODO(synk): attention-mask path (masked_fill with -inf) not implemented.
    dec_output, self_attention = multi_head_attention(
        dec_inputs, dec_inputs, dec_inputs, attn_params, num_heads)
    dec_output, context_attention = multi_head_attention(
        enc_outputs, enc_outputs, dec_output, attn_params, num_heads,
        ffn_params=ffn_params)   # FFN fused into the epilogue kernel
    return dec_output, self_attention, context_attention


# --------------------------------------------------------------------------- #
# Pure-JAX reference (mirrors the PyTorch code line by line)
# --------------------------------------------------------------------------- #
def _ref_layernorm(x, g, b):
    m = jnp.mean(x, axis=-1, keepdims=True)
    v = jnp.mean((x - m) ** 2, axis=-1, keepdims=True)
    return (x - m) / jnp.sqrt(v + LN_EPS) * g + b


def _ref_mha(key, value, query, p, num_heads):
    B, _, M = key.shape
    dph = M // num_heads
    residual = query
    k = key @ p['wk'].T + p['bk']
    v = value @ p['wv'].T + p['bv']
    q = query @ p['wq'].T + p['bq']
    k = k.reshape(B * num_heads, -1, dph)
    v = v.reshape(B * num_heads, -1, dph)
    q = q.reshape(B * num_heads, -1, dph)
    scale = (dph // num_heads) ** (-0.5)
    attn = jnp.einsum('bqd,bkd->bqk', q, k)
    if scale:
        attn = attn * scale
    attn = jax.nn.softmax(attn, axis=2)
    ctx = jnp.einsum('bqk,bkd->bqd', attn, v)
    ctx = ctx.reshape(B, -1, dph * num_heads)
    out = ctx @ p['wf'].T + p['bf']
    out = _ref_layernorm(residual + out, p['ln_g'], p['ln_b'])
    return out, attn


def _ref_ffn(x, p):
    h = jax.nn.relu(x @ p['w1'].T + p['b1'])
    y = h @ p['w2'].T + p['b2']
    return _ref_layernorm(x + y, p['ln_g'], p['ln_b'])


def _ref_decoder_layer(dec_inputs, enc_outputs, ap, fp, num_heads):
    d, sa = _ref_mha(dec_inputs, dec_inputs, dec_inputs, ap, num_heads)
    d, ca = _ref_mha(enc_outputs, enc_outputs, d, ap, num_heads)
    d = _ref_ffn(d, fp)
    return d, sa, ca


# --------------------------------------------------------------------------- #
# Demo / self-check
# --------------------------------------------------------------------------- #
if __name__ == "__main__":
    B, L, M = 2, 8, 32          # batch, seq_len, n_feature (model_dim)
    num_heads = 4               # dim_per_head = 8; scale = (8//4)**-0.5
    hid_dim = 64                # FFN width
    HD = (M // num_heads) * num_heads

    key = jax.random.PRNGKey(0)
    ks = jax.random.split(key, 16)

    def rnd(k, shape, s=0.1):
        return jax.random.normal(k, shape, dtype=jnp.float32) * s

    attn_params = {
        'wk': rnd(ks[0], (HD, M)), 'bk': rnd(ks[1], (HD,)),
        'wv': rnd(ks[2], (HD, M)), 'bv': rnd(ks[3], (HD,)),
        'wq': rnd(ks[4], (HD, M)), 'bq': rnd(ks[5], (HD,)),
        'wf': rnd(ks[6], (M, M)),  'bf': rnd(ks[7], (M,)),
        'ln_g': jnp.ones((M,), jnp.float32),
        'ln_b': jnp.zeros((M,), jnp.float32),
    }
    ffn_params = {
        'w1': rnd(ks[8], (hid_dim, M)),  'b1': rnd(ks[9], (hid_dim,)),
        'w2': rnd(ks[10], (M, hid_dim)), 'b2': rnd(ks[11], (M,)),
        'ln_g': jnp.ones((M,), jnp.float32),
        'ln_b': jnp.zeros((M,), jnp.float32),
    }

    dec_inputs = jax.random.normal(ks[12], (B, L, M), dtype=jnp.float32)
    enc_outputs = jax.random.normal(ks[13], (B, L, M), dtype=jnp.float32)

    # Prepare (transpose / reshape) parameters once, outside the forward pass.
    attn_prepped = prepare_attn_params(attn_params)
    ffn_prepped = prepare_ffn_params(ffn_params)

    run = jax.jit(functools.partial(decoder_layer, num_heads=num_heads))
    dec_out, self_attn, ctx_attn = run(dec_inputs, enc_outputs,
                                       attn_prepped, ffn_prepped)
    dec_out, self_attn, ctx_attn = jax.block_until_ready(
        (dec_out, self_attn, ctx_attn))

    ref_out, ref_sa, ref_ca = _ref_decoder_layer(
        dec_inputs, enc_outputs, attn_params, ffn_params, num_heads)

    assert dec_out.shape == (B, L, M)
    assert self_attn.shape == (B * num_heads, L, L)
    assert ctx_attn.shape == (B * num_heads, L, L)
    assert jnp.allclose(dec_out, ref_out, atol=1e-4, rtol=1e-4), "dec_out mismatch"
    assert jnp.allclose(self_attn, ref_sa, atol=1e-4, rtol=1e-4), "self_attn mismatch"
    assert jnp.allclose(ctx_attn, ref_ca, atol=1e-4, rtol=1e-4), "ctx_attn mismatch"

    print("KERNEL_OK")
</pallas_src>

<mosaic_0001>
module attributes {stable_mosaic.version = 11 : i64} {
  func.func @_proj_kvq_kernel(%arg0: i32, %arg1: memref<16x32xf32, #tpu.memory_space<vmem>>, %arg2: memref<32x32xf32, #tpu.memory_space<vmem>>, %arg3: memref<1x32xf32, #tpu.memory_space<vmem>>, %arg4: memref<32x32xf32, #tpu.memory_space<vmem>>, %arg5: memref<1x32xf32, #tpu.memory_space<vmem>>, %arg6: memref<32x32xf32, #tpu.memory_space<vmem>>, %arg7: memref<1x32xf32, #tpu.memory_space<vmem>>, %arg8: memref<16x32xf32, #tpu.memory_space<vmem>>, %arg9: memref<16x32xf32, #tpu.memory_space<vmem>>, %arg10: memref<16x32xf32, #tpu.memory_space<vmem>>) attributes {dimension_semantics = [#tpu.dimension_semantics<parallel>], iteration_bounds = array<i64: 1>, scalar_prefetch = 0 : i64, scratch_operands = 0 : i64, tpu.core_type = #tpu.core_type<tc>, window_params = [{transform_indices = @transform_0, window_bounds = array<i64: 16, 32>}, {pipeline_mode = #tpu.pipeline_mode<synchronous>, transform_indices = @transform_1, window_bounds = array<i64: 32, 32>}, {pipeline_mode = #tpu.pipeline_mode<synchronous>, transform_indices = @transform_2, window_bounds = array<i64: 1, 32>}, {pipeline_mode = #tpu.pipeline_mode<synchronous>, transform_indices = @transform_3, window_bounds = array<i64: 32, 32>}, {pipeline_mode = #tpu.pipeline_mode<synchronous>, transform_indices = @transform_4, window_bounds = array<i64: 1, 32>}, {pipeline_mode = #tpu.pipeline_mode<synchronous>, transform_indices = @transform_5, window_bounds = array<i64: 32, 32>}, {pipeline_mode = #tpu.pipeline_mode<synchronous>, transform_indices = @transform_6, window_bounds = array<i64: 1, 32>}, {transform_indices = @transform_7, window_bounds = array<i64: 16, 32>}, {transform_indices = @transform_8, window_bounds = array<i64: 16, 32>}, {transform_indices = @transform_9, window_bounds = array<i64: 16, 32>}]} {
    %c0 = arith.constant 0 : index
    %c0_0 = arith.constant 0 : index
    %0 = vector.load %arg1[%c0, %c0_0] : memref<16x32xf32, #tpu.memory_space<vmem>>, vector<16x32xf32>
    %c0_1 = arith.constant 0 : index
    %c0_2 = arith.constant 0 : index
    %1 = vector.load %arg2[%c0_1, %c0_2] : memref<32x32xf32, #tpu.memory_space<vmem>>, vector<32x32xf32>
    %cst = arith.constant dense<0.000000e+00> : vector<16x32xf32>
    %2 = tpu.matmul %0, %1, %cst {dimension_numbers = #tpu.dot_dimension_numbers<[1], [0], [0], [1], [0, 0, 1, 1], [], []>} : vector<16x32xf32>, vector<32x32xf32>, vector<16x32xf32> -> vector<16x32xf32>
    %c0_3 = arith.constant 0 : index
    %c0_4 = arith.constant 0 : index
    %3 = vector.load %arg3[%c0_3, %c0_4] : memref<1x32xf32, #tpu.memory_space<vmem>>, vector<1x32xf32>
    %4 = vector.broadcast %3 : vector<1x32xf32> to vector<16x32xf32>
    %5 = arith.addf %2, %4 : vector<16x32xf32>
    %c0_5 = arith.constant 0 : index
    %c0_6 = arith.constant 0 : index
    %6 = vector.load %arg4[%c0_5, %c0_6] : memref<32x32xf32, #tpu.memory_space<vmem>>, vector<32x32xf32>
    %cst_7 = arith.constant dense<0.000000e+00> : vector<16x32xf32>
    %7 = tpu.matmul %0, %6, %cst_7 {dimension_numbers = #tpu.dot_dimension_numbers<[1], [0], [0], [1], [0, 0, 1, 1], [], []>} : vector<16x32xf32>, vector<32x32xf32>, vector<16x32xf32> -> vector<16x32xf32>
    %c0_8 = arith.constant 0 : index
    %c0_9 = arith.constant 0 : index
    %8 = vector.load %arg5[%c0_8, %c0_9] : memref<1x32xf32, #tpu.memory_space<vmem>>, vector<1x32xf32>
    %9 = vector.broadcast %8 : vector<1x32xf32> to vector<16x32xf32>
    %10 = arith.addf %7, %9 : vector<16x32xf32>
    %c0_10 = arith.constant 0 : index
    %c0_11 = arith.constant 0 : index
    %11 = vector.load %arg6[%c0_10, %c0_11] : memref<32x32xf32, #tpu.memory_space<vmem>>, vector<32x32xf32>
    %cst_12 = arith.constant dense<0.000000e+00> : vector<16x32xf32>
    %12 = tpu.matmul %0, %11, %cst_12 {dimension_numbers = #tpu.dot_dimension_numbers<[1], [0], [0], [1], [0, 0, 1, 1], [], []>} : vector<16x32xf32>, vector<32x32xf32>, vector<16x32xf32> -> vector<16x32xf32>
    %c0_13 = arith.constant 0 : index
    %c0_14 = arith.constant 0 : index
    %13 = vector.load %arg7[%c0_13, %c0_14] : memref<1x32xf32, #tpu.memory_space<vmem>>, vector<1x32xf32>
    %14 = vector.broadcast %13 : vector<1x32xf32> to vector<16x32xf32>
    %15 = arith.addf %12, %14 : vector<16x32xf32>
    %c0_15 = arith.constant 0 : index
    %c0_16 = arith.constant 0 : index
    %16 = vector.load %arg8[%c0_15, %c0_16] : memref<16x32xf32, #tpu.memory_space<vmem>>, vector<16x32xf32>
    tpu.vector_store %arg8[%c0_15, %c0_16], %5 {strides = array<i32>} : memref<16x32xf32, #tpu.memory_space<vmem>>, vector<16x32xf32>,
    %c0_17 = arith.constant 0 : index
    %c0_18 = arith.constant 0 : index
    %17 = vector.load %arg9[%c0_17, %c0_18] : memref<16x32xf32, #tpu.memory_space<vmem>>, vector<16x32xf32>
    tpu.vector_store %arg9[%c0_17, %c0_18], %10 {strides = array<i32>} : memref<16x32xf32, #tpu.memory_space<vmem>>, vector<16x32xf32>,
    %c0_19 = arith.constant 0 : index
    %c0_20 = arith.constant 0 : index
    %18 = vector.load %arg10[%c0_19, %c0_20] : memref<16x32xf32, #tpu.memory_space<vmem>>, vector<16x32xf32>
    tpu.vector_store %arg10[%c0_19, %c0_20], %15 {strides = array<i32>} : memref<16x32xf32, #tpu.memory_space<vmem>>, vector<16x32xf32>,
    return
  }
  func.func @transform_0(%arg0: i32) -> (i32, i32) {
    %c0_i32 = arith.constant 0 : i32
    %c0_i32_0 = arith.constant 0 : i32
    return %arg0, %c0_i32 : i32, i32
  }
  func.func @transform_1(%arg0: i32) -> (i32, i32) {
    %c0_i32 = arith.constant 0 : i32
    %c0_i32_0 = arith.constant 0 : i32
    %c0_i32_1 = arith.constant 0 : i32
    return %c0_i32, %c0_i32_0 : i32, i32
  }
  func.func @transform_2(%arg0: i32) -> (i32, i32) {
    %c0_i32 = arith.constant 0 : i32
    %c0_i32_0 = arith.constant 0 : i32
    %c0_i32_1 = arith.constant 0 : i32
    return %c0_i32, %c0_i32_0 : i32, i32
  }
  func.func @transform_3(%arg0: i32) -> (i32, i32) {
    %c0_i32 = arith.constant 0 : i32
    %c0_i32_0 = arith.constant 0 : i32
    %c0_i32_1 = arith.constant 0 : i32
    return %c0_i32, %c0_i32_0 : i32, i32
  }
  func.func @transform_4(%arg0: i32) -> (i32, i32) {
    %c0_i32 = arith.constant 0 : i32
    %c0_i32_0 = arith.constant 0 : i32
    %c0_i32_1 = arith.constant 0 : i32
    return %c0_i32, %c0_i32_0 : i32, i32
  }
  func.func @transform_5(%arg0: i32) -> (i32, i32) {
    %c0_i32 = arith.constant 0 : i32
    %c0_i32_0 = arith.constant 0 : i32
    %c0_i32_1 = arith.constant 0 : i32
    return %c0_i32, %c0_i32_0 : i32, i32
  }
  func.func @transform_6(%arg0: i32) -> (i32, i32) {
    %c0_i32 = arith.constant 0 : i32
    %c0_i32_0 = arith.constant 0 : i32
    %c0_i32_1 = arith.constant 0 : i32
    return %c0_i32, %c0_i32_0 : i32, i32
  }
  func.func @transform_7(%arg0: i32) -> (i32, i32) {
    %c0_i32 = arith.constant 0 : i32
    %c0_i32_0 = arith.constant 0 : i32
    return %arg0, %c0_i32 : i32, i32
  }
  func.func @transform_8(%arg0: i32) -> (i32, i32) {
    %c0_i32 = arith.constant 0 : i32
    %c0_i32_0 = arith.constant 0 : i32
    return %arg0, %c0_i32 : i32, i32
  }
  func.func @transform_9(%arg0: i32) -> (i32, i32) {
    %c0_i32 = arith.constant 0 : i32
    %c0_i32_0 = arith.constant 0 : i32
    return %arg0, %c0_i32 : i32, i32
  }
}

module attributes {stable_mosaic.version = 11 : i64} {
  func.func @_attention_kernel(%arg0: i32, %arg1: memref<8x8x8xf32, #tpu.memory_space<vmem>>, %arg2: memref<8x8x8xf32, #tpu.memory_space<vmem>>, %arg3: memref<8x8x8xf32, #tpu.memory_space<vmem>>, %arg4: memref<8x8x8xf32, #tpu.memory_space<vmem>>, %arg5: memref<8x8x8xf32, #tpu.memory_space<vmem>>) attributes {dimension_semantics = [#tpu.dimension_semantics<parallel>], iteration_bounds = array<i64: 1>, scalar_prefetch = 0 : i64, scratch_operands = 0 : i64, tpu.core_type = #tpu.core_type<tc>, window_params = [{transform_indices = @transform_0, window_bounds = array<i64: 8, 8, 8>}, {transform_indices = @transform_1, window_bounds = array<i64: 8, 8, 8>}, {transform_indices = @transform_2, window_bounds = array<i64: 8, 8, 8>}, {transform_indices = @transform_3, window_bounds = array<i64: 8, 8, 8>}, {transform_indices = @transform_4, window_bounds = array<i64: 8, 8, 8>}]} {
    %c0 = arith.constant 0 : index
    %c0_0 = arith.constant 0 : index
    %c0_1 = arith.constant 0 : index
    %0 = vector.load %arg1[%c0, %c0_0, %c0_1] : memref<8x8x8xf32, #tpu.memory_space<vmem>>, vector<8x8x8xf32>
    %c0_2 = arith.constant 0 : index
    %c0_3 = arith.constant 0 : index
    %c0_4 = arith.constant 0 : index
    %1 = vector.load %arg2[%c0_2, %c0_3, %c0_4] : memref<8x8x8xf32, #tpu.memory_space<vmem>>, vector<8x8x8xf32>
    %c0_5 = arith.constant 0 : index
    %c0_6 = arith.constant 0 : index
    %c0_7 = arith.constant 0 : index
    %2 = vector.load %arg3[%c0_5, %c0_6, %c0_7] : memref<8x8x8xf32, #tpu.memory_space<vmem>>, vector<8x8x8xf32>
    "tpu.trace_start"() <{level = 10 : i32, message = "hqd,hkd->hqk"}> : () -> ()
    %cst = arith.constant dense<0.000000e+00> : vector<8x8x8xf32>
    %3 = tpu.matmul %0, %1, %cst {dimension_numbers = #tpu.dot_dimension_numbers<[2], [2], [1], [1], [0, 0, 0, 1, 1, 1], [0], [0]>} : vector<8x8x8xf32>, vector<8x8x8xf32>, vector<8x8x8xf32> -> vector<8x8x8xf32>
    "tpu.trace_stop"() : () -> ()
    %cst_8 = arith.constant 0.707106769 : f32
    %4 = vector.broadcast %cst_8 : f32 to vector<8x8x8xf32>
    %5 = arith.mulf %3, %4 : vector<8x8x8xf32>
    %cst_9 = arith.constant dense<0xFF800000> : vector<8x8xf32>
    %6 = vector.multi_reduction <maximumf>, %5, %cst_9 [2] : vector<8x8x8xf32> to vector<8x8xf32>
    %7 = vector.shape_cast %6 : vector<8x8xf32> to vector<8x8x1xf32>
    %8 = vector.broadcast %7 : vector<8x8x1xf32> to vector<8x8x8xf32>
    %9 = arith.subf %5, %8 : vector<8x8x8xf32>
    %10 = math.exp %9 : vector<8x8x8xf32>
    %cst_10 = arith.constant dense<0.000000e+00> : vector<8x8xf32>
    %11 = vector.multi_reduction <add>, %10, %cst_10 [2] : vector<8x8x8xf32> to vector<8x8xf32>
    %12 = vector.shape_cast %11 : vector<8x8xf32> to vector<8x8x1xf32>
    %13 = tpu.reciprocal %12 : vector<8x8x1xf32> -> vector<8x8x1xf32>
    %14 = vector.broadcast %13 : vector<8x8x1xf32> to vector<8x8x8xf32>
    %15 = arith.mulf %10, %14 : vector<8x8x8xf32>
    %c0_11 = arith.constant 0 : index
    %c0_12 = arith.constant 0 : index
    %c0_13 = arith.constant 0 : index
    %16 = vector.load %arg5[%c0_11, %c0_12, %c0_13] : memref<8x8x8xf32, #tpu.memory_space<vmem>>, vector<8x8x8xf32>
    tpu.vector_store %arg5[%c0_11, %c0_12, %c0_13], %15 {strides = array<i32>} : memref<8x8x8xf32, #tpu.memory_space<vmem>>, vector<8x8x8xf32>,
    "tpu.trace_start"() <{level = 10 : i32, message = "hqk,hkd->hqd"}> : () -> ()
    %cst_14 = arith.constant dense<0.000000e+00> : vector<8x8x8xf32>
    %17 = tpu.matmul %15, %2, %cst_14 {dimension_numbers = #tpu.dot_dimension_numbers<[2], [1], [1], [2], [0, 0, 0, 1, 1, 2], [0], [0]>} : vector<8x8x8xf32>, vector<8x8x8xf32>, vector<8x8x8xf32> -> vector<8x8x8xf32>
    "tpu.trace_stop"() : () -> ()
    %c0_15 = arith.constant 0 : index
    %c0_16 = arith.constant 0 : index
    %c0_17 = arith.constant 0 : index
    %18 = vector.load %arg4[%c0_15, %c0_16, %c0_17] : memref<8x8x8xf32, #tpu.memory_space<vmem>>, vector<8x8x8xf32>
    tpu.vector_store %arg4[%c0_15, %c0_16, %c0_17], %17 {strides = array<i32>} : memref<8x8x8xf32, #tpu.memory_space<vmem>>, vector<8x8x8xf32>,
    return
  }
  func.func @transform_0(%arg0: i32) -> (i32, i32, i32) {
    %c0_i32 = arith.constant 0 : i32
    %c0_i32_0 = arith.constant 0 : i32
    %c0_i32_1 = arith.constant 0 : i32
    return %arg0, %c0_i32, %c0_i32_0 : i32, i32, i32
  }
  func.func @transform_1(%arg0: i32) -> (i32, i32, i32) {
    %c0_i32 = arith.constant 0 : i32
    %c0_i32_0 = arith.constant 0 : i32
    %c0_i32_1 = arith.constant 0 : i32
    return %arg0, %c0_i32, %c0_i32_0 : i32, i32, i32
  }
  func.func @transform_2(%arg0: i32) -> (i32, i32, i32) {
    %c0_i32 = arith.constant 0 : i32
    %c0_i32_0 = arith.constant 0 : i32
    %c0_i32_1 = arith.constant 0 : i32
    return %arg0, %c0_i32, %c0_i32_0 : i32, i32, i32
  }
  func.func @transform_3(%arg0: i32) -> (i32, i32, i32) {
    %c0_i32 = arith.constant 0 : i32
    %c0_i32_0 = arith.constant 0 : i32
    %c0_i32_1 = arith.constant 0 : i32
    return %arg0, %c0_i32, %c0_i32_0 : i32, i32, i32
  }
  func.func @transform_4(%arg0: i32) -> (i32, i32, i32) {
    %c0_i32 = arith.constant 0 : i32
    %c0_i32_0 = arith.constant 0 : i32
    %c0_i32_1 = arith.constant 0 : i32
    return %arg0, %c0_i32, %c0_i32_0 : i32, i32, i32
  }
}

module attributes {stable_mosaic.version = 11 : i64} {
  func.func @_out_proj_ln_kernel(%arg0: i32, %arg1: memref<16x32xf32, #tpu.memory_space<vmem>>, %arg2: memref<16x32xf32, #tpu.memory_space<vmem>>, %arg3: memref<32x32xf32, #tpu.memory_space<vmem>>, %arg4: memref<1x32xf32, #tpu.memory_space<vmem>>, %arg5: memref<1x32xf32, #tpu.memory_space<vmem>>, %arg6: memref<1x32xf32, #tpu.memory_space<vmem>>, %arg7: memref<16x32xf32, #tpu.memory_space<vmem>>) attributes {dimension_semantics = [#tpu.dimension_semantics<parallel>], iteration_bounds = array<i64: 1>, scalar_prefetch = 0 : i64, scratch_operands = 0 : i64, tpu.core_type = #tpu.core_type<tc>, window_params = [{transform_indices = @transform_0, window_bounds = array<i64: 16, 32>}, {transform_indices = @transform_1, window_bounds = array<i64: 16, 32>}, {pipeline_mode = #tpu.pipeline_mode<synchronous>, transform_indices = @transform_2, window_bounds = array<i64: 32, 32>}, {pipeline_mode = #tpu.pipeline_mode<synchronous>, transform_indices = @transform_3, window_bounds = array<i64: 1, 32>}, {pipeline_mode = #tpu.pipeline_mode<synchronous>, transform_indices = @transform_4, window_bounds = array<i64: 1, 32>}, {pipeline_mode = #tpu.pipeline_mode<synchronous>, transform_indices = @transform_5, window_bounds = array<i64: 1, 32>}, {transform_indices = @transform_6, window_bounds = array<i64: 16, 32>}]} {
    %c0 = arith.constant 0 : index
    %c0_0 = arith.constant 0 : index
    %0 = vector.load %arg1[%c0, %c0_0] : memref<16x32xf32, #tpu.memory_space<vmem>>, vector<16x32xf32>
    %c0_1 = arith.constant 0 : index
    %c0_2 = arith.constant 0 : index
    %1 = vector.load %arg3[%c0_1, %c0_2] : memref<32x32xf32, #tpu.memory_space<vmem>>, vector<32x32xf32>
    %cst = arith.constant dense<0.000000e+00> : vector<16x32xf32>
    %2 = tpu.matmul %0, %1, %cst {dimension_numbers = #tpu.dot_dimension_numbers<[1], [0], [0], [1], [0, 0, 1, 1], [], []>} : vector<16x32xf32>, vector<32x32xf32>, vector<16x32xf32> -> vector<16x32xf32>
    %c0_3 = arith.constant 0 : index
    %c0_4 = arith.constant 0 : index
    %3 = vector.load %arg4[%c0_3, %c0_4] : memref<1x32xf32, #tpu.memory_space<vmem>>, vector<1x32xf32>
    %4 = vector.broadcast %3 : vector<1x32xf32> to vector<16x32xf32>
    %5 = arith.addf %2, %4 : vector<16x32xf32>
    %c0_5 = arith.constant 0 : index
    %c0_6 = arith.constant 0 : index
    %6 = vector.load %arg2[%c0_5, %c0_6] : memref<16x32xf32, #tpu.memory_space<vmem>>, vector<16x32xf32>
    %7 = arith.addf %6, %5 : vector<16x32xf32>
    %c0_7 = arith.constant 0 : index
    %c0_8 = arith.constant 0 : index
    %8 = vector.load %arg5[%c0_7, %c0_8] : memref<1x32xf32, #tpu.memory_space<vmem>>, vector<1x32xf32>
    %c0_9 = arith.constant 0 : index
    %c0_10 = arith.constant 0 : index
    %9 = vector.load %arg6[%c0_9, %c0_10] : memref<1x32xf32, #tpu.memory_space<vmem>>, vector<1x32xf32>
    %cst_11 = arith.constant dense<0.000000e+00> : vector<16xf32>
    %10 = vector.multi_reduction <add>, %7, %cst_11 [1] : vector<16x32xf32> to vector<16xf32>
    %11 = vector.shape_cast %10 : vector<16xf32> to vector<16x1xf32>
    %cst_12 = arith.constant 3.200000e+01 : f32
    %12 = vector.broadcast %cst_12 : f32 to vector<16x1xf32>
    %13 = arith.divf %11, %12 : vector<16x1xf32>
    %14 = vector.broadcast %13 : vector<16x1xf32> to vector<16x32xf32>
    %15 = arith.subf %7, %14 : vector<16x32xf32>
    %16 = arith.mulf %15, %15 : vector<16x32xf32>
    %cst_13 = arith.constant dense<0.000000e+00> : vector<16xf32>
    %17 = vector.multi_reduction <add>, %16, %cst_13 [1] : vector<16x32xf32> to vector<16xf32>
    %18 = vector.shape_cast %17 : vector<16xf32> to vector<16x1xf32>
    %cst_14 = arith.constant 3.200000e+01 : f32
    %19 = vector.broadcast %cst_14 : f32 to vector<16x1xf32>
    %20 = arith.divf %18, %19 : vector<16x1xf32>
    %cst_15 = arith.constant 9.99999974E-6 : f32
    %21 = vector.broadcast %cst_15 : f32 to vector<16x1xf32>
    %22 = arith.addf %20, %21 : vector<16x1xf32>
    %23 = math.rsqrt %22 : vector<16x1xf32>
    %24 = vector.broadcast %23 : vector<16x1xf32> to vector<16x32xf32>
    %25 = arith.mulf %15, %24 : vector<16x32xf32>
    %26 = vector.broadcast %8 : vector<1x32xf32> to vector<16x32xf32>
    %27 = arith.mulf %25, %26 : vector<16x32xf32>
    %28 = vector.broadcast %9 : vector<1x32xf32> to vector<16x32xf32>
    %29 = arith.addf %27, %28 : vector<16x32xf32>
    %c0_16 = arith.constant 0 : index
    %c0_17 = arith.constant 0 : index
    %30 = vector.load %arg7[%c0_16, %c0_17] : memref<16x32xf32, #tpu.memory_space<vmem>>, vector<16x32xf32>
    tpu.vector_store %arg7[%c0_16, %c0_17], %29 {strides = array<i32>} : memref<16x32xf32, #tpu.memory_space<vmem>>, vector<16x32xf32>,
    return
  }
  func.func @transform_0(%arg0: i32) -> (i32, i32) {
    %c0_i32 = arith.constant 0 : i32
    %c0_i32_0 = arith.constant 0 : i32
    return %arg0, %c0_i32 : i32, i32
  }
  func.func @transform_1(%arg0: i32) -> (i32, i32) {
    %c0_i32 = arith.constant 0 : i32
    %c0_i32_0 = arith.constant 0 : i32
    return %arg0, %c0_i32 : i32, i32
  }
  func.func @transform_2(%arg0: i32) -> (i32, i32) {
    %c0_i32 = arith.constant 0 : i32
    %c0_i32_0 = arith.constant 0 : i32
    %c0_i32_1 = arith.constant 0 : i32
    return %c0_i32, %c0_i32_0 : i32, i32
  }
  func.func @transform_3(%arg0: i32) -> (i32, i32) {
    %c0_i32 = arith.constant 0 : i32
    %c0_i32_0 = arith.constant 0 : i32
    %c0_i32_1 = arith.constant 0 : i32
    return %c0_i32, %c0_i32_0 : i32, i32
  }
  func.func @transform_4(%arg0: i32) -> (i32, i32) {
    %c0_i32 = arith.constant 0 : i32
    %c0_i32_0 = arith.constant 0 : i32
    %c0_i32_1 = arith.constant 0 : i32
    return %c0_i32, %c0_i32_0 : i32, i32
  }
  func.func @transform_5(%arg0: i32) -> (i32, i32) {
    %c0_i32 = arith.constant 0 : i32
    %c0_i32_0 = arith.constant 0 : i32
    %c0_i32_1 = arith.constant 0 : i32
    return %c0_i32, %c0_i32_0 : i32, i32
  }
  func.func @transform_6(%arg0: i32) -> (i32, i32) {
    %c0_i32 = arith.constant 0 : i32
    %c0_i32_0 = arith.constant 0 : i32
    return %arg0, %c0_i32 : i32, i32
  }
}

module attributes {stable_mosaic.version = 11 : i64} {
  func.func @_proj_kv_q_kernel(%arg0: i32, %arg1: memref<16x32xf32, #tpu.memory_space<vmem>>, %arg2: memref<16x32xf32, #tpu.memory_space<vmem>>, %arg3: memref<32x32xf32, #tpu.memory_space<vmem>>, %arg4: memref<1x32xf32, #tpu.memory_space<vmem>>, %arg5: memref<32x32xf32, #tpu.memory_space<vmem>>, %arg6: memref<1x32xf32, #tpu.memory_space<vmem>>, %arg7: memref<32x32xf32, #tpu.memory_space<vmem>>, %arg8: memref<1x32xf32, #tpu.memory_space<vmem>>, %arg9: memref<16x32xf32, #tpu.memory_space<vmem>>, %arg10: memref<16x32xf32, #tpu.memory_space<vmem>>, %arg11: memref<16x32xf32, #tpu.memory_space<vmem>>) attributes {dimension_semantics = [#tpu.dimension_semantics<parallel>], iteration_bounds = array<i64: 1>, scalar_prefetch = 0 : i64, scratch_operands = 0 : i64, tpu.core_type = #tpu.core_type<tc>, window_params = [{transform_indices = @transform_0, window_bounds = array<i64: 16, 32>}, {transform_indices = @transform_1, window_bounds = array<i64: 16, 32>}, {pipeline_mode = #tpu.pipeline_mode<synchronous>, transform_indices = @transform_2, window_bounds = array<i64: 32, 32>}, {pipeline_mode = #tpu.pipeline_mode<synchronous>, transform_indices = @transform_3, window_bounds = array<i64: 1, 32>}, {pipeline_mode = #tpu.pipeline_mode<synchronous>, transform_indices = @transform_4, window_bounds = array<i64: 32, 32>}, {pipeline_mode = #tpu.pipeline_mode<synchronous>, transform_indices = @transform_5, window_bounds = array<i64: 1, 32>}, {pipeline_mode = #tpu.pipeline_mode<synchronous>, transform_indices = @transform_6, window_bounds = array<i64: 32, 32>}, {pipeline_mode = #tpu.pipeline_mode<synchronous>, transform_indices = @transform_7, window_bounds = array<i64: 1, 32>}, {transform_indices = @transform_8, window_bounds = array<i64: 16, 32>}, {transform_indices = @transform_9, window_bounds = array<i64: 16, 32>}, {transform_indices = @transform_10, window_bounds = array<i64: 16, 32>}]} {
    %c0 = arith.constant 0 : index
    %c0_0 = arith.constant 0 : index
    %0 = vector.load %arg1[%c0, %c0_0] : memref<16x32xf32, #tpu.memory_space<vmem>>, vector<16x32xf32>
    %c0_1 = arith.constant 0 : index
    %c0_2 = arith.constant 0 : index
    %1 = vector.load %arg3[%c0_1, %c0_2] : memref<32x32xf32, #tpu.memory_space<vmem>>, vector<32x32xf32>
    %cst = arith.constant dense<0.000000e+00> : vector<16x32xf32>
    %2 = tpu.matmul %0, %1, %cst {dimension_numbers = #tpu.dot_dimension_numbers<[1], [0], [0], [1], [0, 0, 1, 1], [], []>} : vector<16x32xf32>, vector<32x32xf32>, vector<16x32xf32> -> vector<16x32xf32>
    %c0_3 = arith.constant 0 : index
    %c0_4 = arith.constant 0 : index
    %3 = vector.load %arg4[%c0_3, %c0_4] : memref<1x32xf32, #tpu.memory_space<vmem>>, vector<1x32xf32>
    %4 = vector.broadcast %3 : vector<1x32xf32> to vector<16x32xf32>
    %5 = arith.addf %2, %4 : vector<16x32xf32>
    %c0_5 = arith.constant 0 : index
    %c0_6 = arith.constant 0 : index
    %6 = vector.load %arg5[%c0_5, %c0_6] : memref<32x32xf32, #tpu.memory_space<vmem>>, vector<32x32xf32>
    %cst_7 = arith.constant dense<0.000000e+00> : vector<16x32xf32>
    %7 = tpu.matmul %0, %6, %cst_7 {dimension_numbers = #tpu.dot_dimension_numbers<[1], [0], [0], [1], [0, 0, 1, 1], [], []>} : vector<16x32xf32>, vector<32x32xf32>, vector<16x32xf32> -> vector<16x32xf32>
    %c0_8 = arith.constant 0 : index
    %c0_9 = arith.constant 0 : index
    %8 = vector.load %arg6[%c0_8, %c0_9] : memref<1x32xf32, #tpu.memory_space<vmem>>, vector<1x32xf32>
    %9 = vector.broadcast %8 : vector<1x32xf32> to vector<16x32xf32>
    %10 = arith.addf %7, %9 : vector<16x32xf32>
    %c0_10 = arith.constant 0 : index
    %c0_11 = arith.constant 0 : index
    %11 = vector.load %arg2[%c0_10, %c0_11] : memref<16x32xf32, #tpu.memory_space<vmem>>, vector<16x32xf32>
    %c0_12 = arith.constant 0 : index
    %c0_13 = arith.constant 0 : index
    %12 = vector.load %arg7[%c0_12, %c0_13] : memref<32x32xf32, #tpu.memory_space<vmem>>, vector<32x32xf32>
    %cst_14 = arith.constant dense<0.000000e+00> : vector<16x32xf32>
    %13 = tpu.matmul %11, %12, %cst_14 {dimension_numbers = #tpu.dot_dimension_numbers<[1], [0], [0], [1], [0, 0, 1, 1], [], []>} : vector<16x32xf32>, vector<32x32xf32>, vector<16x32xf32> -> vector<16x32xf32>
    %c0_15 = arith.constant 0 : index
    %c0_16 = arith.constant 0 : index
    %14 = vector.load %arg8[%c0_15, %c0_16] : memref<1x32xf32, #tpu.memory_space<vmem>>, vector<1x32xf32>
    %15 = vector.broadcast %14 : vector<1x32xf32> to vector<16x32xf32>
    %16 = arith.addf %13, %15 : vector<16x32xf32>
    %c0_17 = arith.constant 0 : index
    %c0_18 = arith.constant 0 : index
    %17 = vector.load %arg9[%c0_17, %c0_18] : memref<16x32xf32, #tpu.memory_space<vmem>>, vector<16x32xf32>
    tpu.vector_store %arg9[%c0_17, %c0_18], %5 {strides = array<i32>} : memref<16x32xf32, #tpu.memory_space<vmem>>, vector<16x32xf32>,
    %c0_19 = arith.constant 0 : index
    %c0_20 = arith.constant 0 : index
    %18 = vector.load %arg10[%c0_19, %c0_20] : memref<16x32xf32, #tpu.memory_space<vmem>>, vector<16x32xf32>
    tpu.vector_store %arg10[%c0_19, %c0_20], %10 {strides = array<i32>} : memref<16x32xf32, #tpu.memory_space<vmem>>, vector<16x32xf32>,
    %c0_21 = arith.constant 0 : index
    %c0_22 = arith.constant 0 : index
    %19 = vector.load %arg11[%c0_21, %c0_22] : memref<16x32xf32, #tpu.memory_space<vmem>>, vector<16x32xf32>
    tpu.vector_store %arg11[%c0_21, %c0_22], %16 {strides = array<i32>} : memref<16x32xf32, #tpu.memory_space<vmem>>, vector<16x32xf32>,
    return
  }
  func.func @transform_0(%arg0: i32) -> (i32, i32) {
    %c0_i32 = arith.constant 0 : i32
    %c0_i32_0 = arith.constant 0 : i32
    return %arg0, %c0_i32 : i32, i32
  }
  func.func @transform_1(%arg0: i32) -> (i32, i32) {
    %c0_i32 = arith.constant 0 : i32
    %c0_i32_0 = arith.constant 0 : i32
    return %arg0, %c0_i32 : i32, i32
  }
  func.func @transform_2(%arg0: i32) -> (i32, i32) {
    %c0_i32 = arith.constant 0 : i32
    %c0_i32_0 = arith.constant 0 : i32
    %c0_i32_1 = arith.constant 0 : i32
    return %c0_i32, %c0_i32_0 : i32, i32
  }
  func.func @transform_3(%arg0: i32) -> (i32, i32) {
    %c0_i32 = arith.constant 0 : i32
    %c0_i32_0 = arith.constant 0 : i32
    %c0_i32_1 = arith.constant 0 : i32
    return %c0_i32, %c0_i32_0 : i32, i32
  }
  func.func @transform_4(%arg0: i32) -> (i32, i32) {
    %c0_i32 = arith.constant 0 : i32
    %c0_i32_0 = arith.constant 0 : i32
    %c0_i32_1 = arith.constant 0 : i32
    return %c0_i32, %c0_i32_0 : i32, i32
  }
  func.func @transform_5(%arg0: i32) -> (i32, i32) {
    %c0_i32 = arith.constant 0 : i32
    %c0_i32_0 = arith.constant 0 : i32
    %c0_i32_1 = arith.constant 0 : i32
    return %c0_i32, %c0_i32_0 : i32, i32
  }
  func.func @transform_6(%arg0: i32) -> (i32, i32) {
    %c0_i32 = arith.constant 0 : i32
    %c0_i32_0 = arith.constant 0 : i32
    %c0_i32_1 = arith.constant 0 : i32
    return %c0_i32, %c0_i32_0 : i32, i32
  }
  func.func @transform_7(%arg0: i32) -> (i32, i32) {
    %c0_i32 = arith.constant 0 : i32
    %c0_i32_0 = arith.constant 0 : i32
    %c0_i32_1 = arith.constant 0 : i32
    return %c0_i32, %c0_i32_0 : i32, i32
  }
  func.func @transform_8(%arg0: i32) -> (i32, i32) {
    %c0_i32 = arith.constant 0 : i32
    %c0_i32_0 = arith.constant 0 : i32
    return %arg0, %c0_i32 : i32, i32
  }
  func.func @transform_9(%arg0: i32) -> (i32, i32) {
    %c0_i32 = arith.constant 0 : i32
    %c0_i32_0 = arith.constant 0 : i32
    return %arg0, %c0_i32 : i32, i32
  }
  func.func @transform_10(%arg0: i32) -> (i32, i32) {
    %c0_i32 = arith.constant 0 : i32
    %c0_i32_0 = arith.constant 0 : i32
    return %arg0, %c0_i32 : i32, i32
  }
}

module attributes {stable_mosaic.version = 11 : i64} {
  func.func @_out_proj_ln_ffn_kernel(%arg0: i32, %arg1: memref<16x32xf32, #tpu.memory_space<vmem>>, %arg2: memref<16x32xf32, #tpu.memory_space<vmem>>, %arg3: memref<32x32xf32, #tpu.memory_space<vmem>>, %arg4: memref<1x32xf32, #tpu.memory_space<vmem>>, %arg5: memref<1x32xf32, #tpu.memory_space<vmem>>, %arg6: memref<1x32xf32, #tpu.memory_space<vmem>>, %arg7: memref<32x64xf32, #tpu.memory_space<vmem>>, %arg8: memref<1x64xf32, #tpu.memory_space<vmem>>, %arg9: memref<64x32xf32, #tpu.memory_space<vmem>>, %arg10: memref<1x32xf32, #tpu.memory_space<vmem>>, %arg11: memref<1x32xf32, #tpu.memory_space<vmem>>, %arg12: memref<1x32xf32, #tpu.memory_space<vmem>>, %arg13: memref<16x32xf32, #tpu.memory_space<vmem>>) attributes {dimension_semantics = [#tpu.dimension_semantics<parallel>], iteration_bounds = array<i64: 1>, scalar_prefetch = 0 : i64, scratch_operands = 0 : i64, tpu.core_type = #tpu.core_type<tc>, window_params = [{transform_indices = @transform_0, window_bounds = array<i64: 16, 32>}, {transform_indices = @transform_1, window_bounds = array<i64: 16, 32>}, {pipeline_mode = #tpu.pipeline_mode<synchronous>, transform_indices = @transform_2, window_bounds = array<i64: 32, 32>}, {pipeline_mode = #tpu.pipeline_mode<synchronous>, transform_indices = @transform_3, window_bounds = array<i64: 1, 32>}, {pipeline_mode = #tpu.pipeline_mode<synchronous>, transform_indices = @transform_4, window_bounds = array<i64: 1, 32>}, {pipeline_mode = #tpu.pipeline_mode<synchronous>, transform_indices = @transform_5, window_bounds = array<i64: 1, 32>}, {pipeline_mode = #tpu.pipeline_mode<synchronous>, transform_indices = @transform_6, window_bounds = array<i64: 32, 64>}, {pipeline_mode = #tpu.pipeline_mode<synchronous>, transform_indices = @transform_7, window_bounds = array<i64: 1, 64>}, {pipeline_mode = #tpu.pipeline_mode<synchronous>, transform_indices = @transform_8, window_bounds = array<i64: 64, 32>}, {pipeline_mode = #tpu.pipeline_mode<synchronous>, transform_indices = @transform_9, window_bounds = array<i64: 1, 32>}, {pipeline_mode = #tpu.pipeline_mode<synchronous>, transform_indices = @transform_10, window_bounds = array<i64: 1, 32>}, {pipeline_mode = #tpu.pipeline_mode<synchronous>, transform_indices = @transform_11, window_bounds = array<i64: 1, 32>}, {transform_indices = @transform_12, window_bounds = array<i64: 16, 32>}]} {
    %c0 = arith.constant 0 : index
    %c0_0 = arith.constant 0 : index
    %0 = vector.load %arg1[%c0, %c0_0] : memref<16x32xf32, #tpu.memory_space<vmem>>, vector<16x32xf32>
    %c0_1 = arith.constant 0 : index
    %c0_2 = arith.constant 0 : index
    %1 = vector.load %arg3[%c0_1, %c0_2] : memref<32x32xf32, #tpu.memory_space<vmem>>, vector<32x32xf32>
    %cst = arith.constant dense<0.000000e+00> : vector<16x32xf32>
    %2 = tpu.matmul %0, %1, %cst {dimension_numbers = #tpu.dot_dimension_numbers<[1], [0], [0], [1], [0, 0, 1, 1], [], []>} : vector<16x32xf32>, vector<32x32xf32>, vector<16x32xf32> -> vector<16x32xf32>
    %c0_3 = arith.constant 0 : index
    %c0_4 = arith.constant 0 : index
    %3 = vector.load %arg4[%c0_3, %c0_4] : memref<1x32xf32, #tpu.memory_space<vmem>>, vector<1x32xf32>
    %4 = vector.broadcast %3 : vector<1x32xf32> to vector<16x32xf32>
    %5 = arith.addf %2, %4 : vector<16x32xf32>
    %c0_5 = arith.constant 0 : index
    %c0_6 = arith.constant 0 : index
    %6 = vector.load %arg2[%c0_5, %c0_6] : memref<16x32xf32, #tpu.memory_space<vmem>>, vector<16x32xf32>
    %7 = arith.addf %6, %5 : vector<16x32xf32>
    %c0_7 = arith.constant 0 : index
    %c0_8 = arith.constant 0 : index
    %8 = vector.load %arg5[%c0_7, %c0_8] : memref<1x32xf32, #tpu.memory_space<vmem>>, vector<1x32xf32>
    %c0_9 = arith.constant 0 : index
    %c0_10 = arith.constant 0 : index
    %9 = vector.load %arg6[%c0_9, %c0_10] : memref<1x32xf32, #tpu.memory_space<vmem>>, vector<1x32xf32>
    %cst_11 = arith.constant dense<0.000000e+00> : vector<16xf32>
    %10 = vector.multi_reduction <add>, %7, %cst_11 [1] : vector<16x32xf32> to vector<16xf32>
    %11 = vector.shape_cast %10 : vector<16xf32> to vector<16x1xf32>
    %cst_12 = arith.constant 3.200000e+01 : f32
    %12 = vector.broadcast %cst_12 : f32 to vector<16x1xf32>
    %13 = arith.divf %11, %12 : vector<16x1xf32>
    %14 = vector.broadcast %13 : vector<16x1xf32> to vector<16x32xf32>
    %15 = arith.subf %7, %14 : vector<16x32xf32>
    %16 = arith.mulf %15, %15 : vector<16x32xf32>
    %cst_13 = arith.constant dense<0.000000e+00> : vector<16xf32>
    %17 = vector.multi_reduction <add>, %16, %cst_13 [1] : vector<16x32xf32> to vector<16xf32>
    %18 = vector.shape_cast %17 : vector<16xf32> to vector<16x1xf32>
    %cst_14 = arith.constant 3.200000e+01 : f32
    %19 = vector.broadcast %cst_14 : f32 to vector<16x1xf32>
    %20 = arith.divf %18, %19 : vector<16x1xf32>
    %cst_15 = arith.constant 9.99999974E-6 : f32
    %21 = vector.broadcast %cst_15 : f32 to vector<16x1xf32>
    %22 = arith.addf %20, %21 : vector<16x1xf32>
    %23 = math.rsqrt %22 : vector<16x1xf32>
    %24 = vector.broadcast %23 : vector<16x1xf32> to vector<16x32xf32>
    %25 = arith.mulf %15, %24 : vector<16x32xf32>
    %26 = vector.broadcast %8 : vector<1x32xf32> to vector<16x32xf32>
    %27 = arith.mulf %25, %26 : vector<16x32xf32>
    %28 = vector.broadcast %9 : vector<1x32xf32> to vector<16x32xf32>
    %29 = arith.addf %27, %28 : vector<16x32xf32>
    %c0_16 = arith.constant 0 : index
    %c0_17 = arith.constant 0 : index
    %30 = vector.load %arg7[%c0_16, %c0_17] : memref<32x64xf32, #tpu.memory_space<vmem>>, vector<32x64xf32>
    %cst_18 = arith.constant dense<0.000000e+00> : vector<16x64xf32>
    %31 = tpu.matmul %29, %30, %cst_18 {dimension_numbers = #tpu.dot_dimension_numbers<[1], [0], [0], [1], [0, 0, 1, 1], [], []>} : vector<16x32xf32>, vector<32x64xf32>, vector<16x64xf32> -> vector<16x64xf32>
    %c0_19 = arith.constant 0 : index
    %c0_20 = arith.constant 0 : index
    %32 = vector.load %arg8[%c0_19, %c0_20] : memref<1x64xf32, #tpu.memory_space<vmem>>, vector<1x64xf32>
    %33 = vector.broadcast %32 : vector<1x64xf32> to vector<16x64xf32>
    %34 = arith.addf %31, %33 : vector<16x64xf32>
    %cst_21 = arith.constant 0.000000e+00 : f32
    %35 = vector.broadcast %cst_21 : f32 to vector<16x64xf32>
    %36 = arith.maximumf %34, %35 : vector<16x64xf32>
    %c0_22 = arith.constant 0 : index
    %c0_23 = arith.constant 0 : index
    %37 = vector.load %arg9[%c0_22, %c0_23] : memref<64x32xf32, #tpu.memory_space<vmem>>, vector<64x32xf32>
    %cst_24 = arith.constant dense<0.000000e+00> : vector<16x32xf32>
    %38 = tpu.matmul %36, %37, %cst_24 {dimension_numbers = #tpu.dot_dimension_numbers<[1], [0], [0], [1], [0, 0, 1, 1], [], []>} : vector<16x64xf32>, vector<64x32xf32>, vector<16x32xf32> -> vector<16x32xf32>
    %c0_25 = arith.constant 0 : index
    %c0_26 = arith.constant 0 : index
    %39 = vector.load %arg10[%c0_25, %c0_26] : memref<1x32xf32, #tpu.memory_space<vmem>>, vector<1x32xf32>
    %40 = vector.broadcast %39 : vector<1x32xf32> to vector<16x32xf32>
    %41 = arith.addf %38, %40 : vector<16x32xf32>
    %42 = arith.addf %29, %41 : vector<16x32xf32>
    %c0_27 = arith.constant 0 : index
    %c0_28 = arith.constant 0 : index
    %43 = vector.load %arg11[%c0_27, %c0_28] : memref<1x32xf32, #tpu.memory_space<vmem>>, vector<1x32xf32>
    %c0_29 = arith.constant 0 : index
    %c0_30 = arith.constant 0 : index
    %44 = vector.load %arg12[%c0_29, %c0_30] : memref<1x32xf32, #tpu.memory_space<vmem>>, vector<1x32xf32>
    %cst_31 = arith.constant dense<0.000000e+00> : vector<16xf32>
    %45 = vector.multi_reduction <add>, %42, %cst_31 [1] : vector<16x32xf32> to vector<16xf32>
    %46 = vector.shape_cast %45 : vector<16xf32> to vector<16x1xf32>
    %cst_32 = arith.constant 3.200000e+01 : f32
    %47 = vector.broadcast %cst_32 : f32 to vector<16x1xf32>
    %48 = arith.divf %46, %47 : vector<16x1xf32>
    %49 = vector.broadcast %48 : vector<16x1xf32> to vector<16x32xf32>
    %50 = arith.subf %42, %49 : vector<16x32xf32>
    %51 = arith.mulf %50, %50 : vector<16x32xf32>
    %cst_33 = arith.constant dense<0.000000e+00> : vector<16xf32>
    %52 = vector.multi_reduction <add>, %51, %cst_33 [1] : vector<16x32xf32> to vector<16xf32>
    %53 = vector.shape_cast %52 : vector<16xf32> to vector<16x1xf32>
    %cst_34 = arith.constant 3.200000e+01 : f32
    %54 = vector.broadcast %cst_34 : f32 to vector<16x1xf32>
    %55 = arith.divf %53, %54 : vector<16x1xf32>
    %cst_35 = arith.constant 9.99999974E-6 : f32
    %56 = vector.broadcast %cst_35 : f32 to vector<16x1xf32>
    %57 = arith.addf %55, %56 : vector<16x1xf32>
    %58 = math.rsqrt %57 : vector<16x1xf32>
    %59 = vector.broadcast %58 : vector<16x1xf32> to vector<16x32xf32>
    %60 = arith.mulf %50, %59 : vector<16x32xf32>
    %61 = vector.broadcast %43 : vector<1x32xf32> to vector<16x32xf32>
    %62 = arith.mulf %60, %61 : vector<16x32xf32>
    %63 = vector.broadcast %44 : vector<1x32xf32> to vector<16x32xf32>
    %64 = arith.addf %62, %63 : vector<16x32xf32>
    %c0_36 = arith.constant 0 : index
    %c0_37 = arith.constant 0 : index
    %65 = vector.load %arg13[%c0_36, %c0_37] : memref<16x32xf32, #tpu.memory_space<vmem>>, vector<16x32xf32>
    tpu.vector_store %arg13[%c0_36, %c0_37], %64 {strides = array<i32>} : memref<16x32xf32, #tpu.memory_space<vmem>>, vector<16x32xf32>,
    return
  }
  func.func @transform_0(%arg0: i32) -> (i32, i32) {
    %c0_i32 = arith.constant 0 : i32
    %c0_i32_0 = arith.constant 0 : i32
    return %arg0, %c0_i32 : i32, i32
  }
  func.func @transform_1(%arg0: i32) -> (i32, i32) {
    %c0_i32 = arith.constant 0 : i32
    %c0_i32_0 = arith.constant 0 : i32
    return %arg0, %c0_i32 : i32, i32
  }
  func.func @transform_2(%arg0: i32) -> (i32, i32) {
    %c0_i32 = arith.constant 0 : i32
    %c0_i32_0 = arith.constant 0 : i32
    %c0_i32_1 = arith.constant 0 : i32
    return %c0_i32, %c0_i32_0 : i32, i32
  }
  func.func @transform_3(%arg0: i32) -> (i32, i32) {
    %c0_i32 = arith.constant 0 : i32
    %c0_i32_0 = arith.constant 0 : i32
    %c0_i32_1 = arith.constant 0 : i32
    return %c0_i32, %c0_i32_0 : i32, i32
  }
  func.func @transform_4(%arg0: i32) -> (i32, i32) {
    %c0_i32 = arith.constant 0 : i32
    %c0_i32_0 = arith.constant 0 : i32
    %c0_i32_1 = arith.constant 0 : i32
    return %c0_i32, %c0_i32_0 : i32, i32
  }
  func.func @transform_5(%arg0: i32) -> (i32, i32) {
    %c0_i32 = arith.constant 0 : i32
    %c0_i32_0 = arith.constant 0 : i32
    %c0_i32_1 = arith.constant 0 : i32
    return %c0_i32, %c0_i32_0 : i32, i32
  }
  func.func @transform_6(%arg0: i32) -> (i32, i32) {
    %c0_i32 = arith.constant 0 : i32
    %c0_i32_0 = arith.constant 0 : i32
    %c0_i32_1 = arith.constant 0 : i32
    return %c0_i32, %c0_i32_0 : i32, i32
  }
  func.func @transform_7(%arg0: i32) -> (i32, i32) {
    %c0_i32 = arith.constant 0 : i32
    %c0_i32_0 = arith.constant 0 : i32
    %c0_i32_1 = arith.constant 0 : i32
    return %c0_i32, %c0_i32_0 : i32, i32
  }
  func.func @transform_8(%arg0: i32) -> (i32, i32) {
    %c0_i32 = arith.constant 0 : i32
    %c0_i32_0 = arith.constant 0 : i32
    %c0_i32_1 = arith.constant 0 : i32
    return %c0_i32, %c0_i32_0 : i32, i32
  }
  func.func @transform_9(%arg0: i32) -> (i32, i32) {
    %c0_i32 = arith.constant 0 : i32
    %c0_i32_0 = arith.constant 0 : i32
    %c0_i32_1 = arith.constant 0 : i32
    return %c0_i32, %c0_i32_0 : i32, i32
  }
  func.func @transform_10(%arg0: i32) -> (i32, i32) {
    %c0_i32 = arith.constant 0 : i32
    %c0_i32_0 = arith.constant 0 : i32
    %c0_i32_1 = arith.constant 0 : i32
    return %c0_i32, %c0_i32_0 : i32, i32
  }
  func.func @transform_11(%arg0: i32) -> (i32, i32) {
    %c0_i32 = arith.constant 0 : i32
    %c0_i32_0 = arith.constant 0 : i32
    %c0_i32_1 = arith.constant 0 : i32
    return %c0_i32, %c0_i32_0 : i32, i32
  }
  func.func @transform_12(%arg0: i32) -> (i32, i32) {
    %c0_i32 = arith.constant 0 : i32
    %c0_i32_0 = arith.constant 0 : i32
    return %arg0, %c0_i32 : i32, i32
  }
}

</mosaic_0001>

<bundles_post_ra>
// kernel: decoder_layer.6
= control target key start
LH: loop header
LB: loop body
LE: loop exit
PB: predicated region body
PF: predicated region fallthrough
CT: control target
= control target key end

     0   :  { %15 = vsyncpa [#allocation3], 0  ;;  %s638_s0 = inlined_call_operand.hbm [shape: f32[16,32], index: 0, kind: input, shape index: {}]   ;;  %s639_s1 = inlined_call_operand.hbm [shape: f32[32,32], index: 1, kind: input, shape index: {}]   ;;  %s640_s2 = inlined_call_operand.vmem [shape: f32[1,32], index: 2, kind: input, shape index: {}]   ;;  %s641_s3 = inlined_call_operand.vmem [shape: f32[32,32], index: 3, kind: input, shape index: {}]   ;;  %s642_s4 = inlined_call_operand.vmem [shape: f32[1,32], index: 4, kind: input, shape index: {}]   ;;  %s643_s5 = inlined_call_operand.hbm [shape: f32[32,32], index: 5, kind: input, shape index: {}]   ;;  %s644_s6 = inlined_call_operand.hbm [shape: f32[1,32], index: 6, kind: input, shape index: {}]   ;;  %s645_s7 = inlined_call_operand.vmem [shape: f32[16,32], index: 7, kind: output, shape index: {0}]   ;;  %s646_s8 = inlined_call_operand.vmem [shape: f32[16,32], index: 8, kind: output, shape index: {1}]   ;;  %s647_s9 = inlined_call_operand.vmem [shape: f32[16,32], index: 9, kind: output, shape index: {2}]  }
   0x1   :  { %16 = vsyncpa [#allocation5], 0 }
   0x2   :  { %17 = vsyncpa [#allocation8], 0  ;;  %s522_s30 = smov [#allocation4]   ;;  %s523_s11 = smov [#allocation2]  }
   0x3   :  { %s35_s10 = sshll.u32 %s522_s30, 4  ;;  %s23_s12 = sshll.u32 %s523_s11, 4  ;;  %s36_s10 = int_to_ptr.vmem [resolvable:$true] %s35_s10  ;;  %s24_s12 = int_to_ptr.vmem [resolvable:$true] %s23_s12 }
   0x4   :  { %s444_s13 = scalar_lea.vmem %s36_s10, 512  ;;  %p449_p1 = scmp.lt.s32.totalorder %s36_s10, %s36_s10 }
   0x5   :  { %p445_p0 = scmp.ne.s32.totalorder %s36_s10, %s444_s13  ;;  %p450_p2 = scmp.lt.s32.totalorder %s444_s13, %s444_s13 }
   0x7   :  { %p451_p3 = por %p450_p2, %p449_p1 }
   0x9   :  { %p452_p4 = pnand %p451_p3, %p445_p0 }
   0xb   :  { %455 = shalt.err (!%p452_p4)
}
   0xc   :  { %s524_s14 = smov 128   ;;  %s525_s15 = smov 8  }
   0xd   :  { %41 = dma.hbm_to_vmem [thread:$0]  %s639_s1, 512, %s36_s10, [#allocation5], %s524_s14, %s524_s14, %s525_s15  }
   0xe   :  { %s464_s18 = scalar_lea.vmem %s24_s12, 256  ;;  %p469_p6 = scmp.lt.s32.totalorder %s24_s12, %s24_s12 }
   0xf   :  { %p465_p5 = scmp.ne.s32.totalorder %s24_s12, %s464_s18  ;;  %p470_p7 = scmp.lt.s32.totalorder %s464_s18, %s464_s18 }
  0x11   :  { %p471_p8 = por %p470_p7, %p469_p6 }
  0x13   :  { %p472_p9 = pnand %p471_p8, %p465_p5 }
  0x15   :  { %475 = shalt.err (!%p472_p9)
}
  0x16   :  { %29 = dma.hbm_to_vmem [thread:$0]  %s638_s0, 256, %s24_s12, [#allocation3], %s524_s14, %s524_s14, %s525_s15  }
  0x17   :  { %s526_s21 = smov [#allocation6]   ;;  %s527_s23 = smov [#allocation7]  }
  0x18   :  { %s53_s22 = sshll.u32 %s526_s21, 4  ;;  %s66_s24 = sshll.u32 %s527_s23, 4  ;;  %s54_s22 = int_to_ptr.vmem [resolvable:$true] %s53_s22  ;;  %s67_s24 = int_to_ptr.vmem [resolvable:$true] %s66_s24 }
  0x19   :  { %s484_s25 = scalar_lea.vmem %s54_s22, 512  ;;  %p489_p11 = scmp.lt.s32.totalorder %s54_s22, %s54_s22 }
  0x1a   :  { %p485_p10 = scmp.ne.s32.totalorder %s54_s22, %s484_s25  ;;  %p490_p12 = scmp.lt.s32.totalorder %s484_s25, %s484_s25 }
  0x1c   :  { %p491_p13 = por %p490_p12, %p489_p11 }
  0x1e   :  { %p492_p0 = pnand %p491_p13, %p485_p10 }
  0x20   :  { %495 = shalt.err (!%p492_p0)
}
  0x21   :  { %59 = dma.hbm_to_vmem [thread:$0]  %s643_s5, 512, %s54_s22, [#allocation5], %s524_s14, %s524_s14, %s525_s15  }
  0x22   :  { %s504_s27 = scalar_lea.vmem %s67_s24, 16  ;;  %s508_s0 = scalar_lea.vmem %s67_s24, 32 }
  0x23   :  { %p505_p1 = scmp.ne.s32.totalorder %s67_s24, %s504_s27  ;;  %p509_p2 = scmp.lt.s32.totalorder %s67_s24, %s67_s24 }
  0x24   :  { %p510_p3 = scmp.lt.s32.totalorder %s508_s0, %s504_s27 }
  0x26   :  { %p511_p4 = por %p510_p3, %p509_p2 }
  0x28   :  { %p512_p5 = pnand %p511_p4, %p505_p1 }
  0x2a   :  { %515 = shalt.err (!%p512_p5)
}
  0x2b   :  { %69 = dma.hbm_to_vmem [thread:$0]  %s644_s6, 16, %s67_s24, [#allocation8]  }
  0x2c   :  { %516 = dma.done.wait [#allocation3], 256  }
  0x2d   :  { %517 = vsyncadd [#allocation3], 4294967040 }
  0x2e   :  { %518 = dma.done.wait [#allocation5], 1024  }
  0x2f   :  { %519 = vsyncadd [#allocation5], 4294966272 }
  0x30   :  { %520 = dma.done.wait [#allocation8], 16  }
  0x31   :  { %521 = vsyncadd [#allocation8], 4294967280  ;;  %v87_v0 = vld [vmem:[#allocation4 + $0x18] sm:$0xff]  ;;  %v86_v1 = vld [vmem:[#allocation4 + $0x10] sm:$0xff]  ;;  %vm95_vm0 = vcmask 261120  }
  0x32   :  { %397 = vmatprep.subr.mxu0 %v87_v0  ;;  %v180_v2 = vld [vmem:[%s641_s3 + $0x18] sm:$0xff]  ;;  %v82_v3 = vld [vmem:[#allocation2] sm:$0xff]  ;;  %v179_v5 = vld [vmem:[%s641_s3 + $0x10] sm:$0xff] }
  0x33   :  { %398 = vmatpush3.msra.mxu0 %v87_v0  ;;  %v85_v4 = vld [vmem:[#allocation4 + $0x8] sm:$0xff]  ;;  %408 = vmatprep.subr.mxu1 %v180_v2  ;;  %v84_v6 = vld [vmem:[#allocation4] sm:$0xff]  ;;  %v178_v7 = vld [vmem:[%s641_s3 + $0x8] sm:$0xff] }
  0x34   :  { %399 = vmatprep.subr.mxu0 %v86_v1  ;;  %405 = vmatprep.mubr.msk.f32.mxu0 %vm95_vm0, %v82_v3  ;;  %v83_v8 = vld [vmem:[#allocation2 + $0x8] sm:$0xff]  ;;  %v177_v10 = vld [vmem:[%s641_s3] sm:$0xff]  ;;  %v264_v12 = vld [vmem:[#allocation6 + $0x8] sm:$0xff] }
  0x35   :  { %400 = vmatpush3.msra.mxu0 %v86_v1  ;;  %409 = vmatpush3.msra.mxu1 %v180_v2  ;;  %v266_v9 = vld [vmem:[#allocation6 + $0x18] sm:$0xff]  ;;  %v265_v11 = vld [vmem:[#allocation6 + $0x10] sm:$0xff]  ;;  %v263_v13 = vld [vmem:[#allocation6] sm:$0xff] }
  0x36   :  { %401 = vmatprep.subr.mxu0 %v85_v4  ;;  %410 = vmatprep.subr.mxu1 %v179_v5  ;;  %v370_v14 = vld [vmem:[%s640_s2] ss:$0 sm:$0xff]  ;;  %v376_v23 = vld [vmem:[#allocation7] ss:$0 sm:$0xff] }
  0x37   :  { %402 = vmatpush3.msra.mxu0 %v85_v4  ;;  %411 = vmatpush3.msra.mxu1 %v179_v5  ;;  %v373_v18 = vld [vmem:[%s642_s4] ss:$0 sm:$0xff] }
  0x38   :  { %403 = vmatprep.subr.mxu0 %v84_v6  ;;  %412 = vmatprep.subr.mxu1 %v178_v7 }
  0x39   :  { %404 = vmatpush3.msra.mxu0 %v84_v6  ;;  %413 = vmatpush3.msra.mxu1 %v178_v7 }
  0x3a   :  { %406 = vmatmul.mubr.msk.f32.vlgmr.msra.gmra.mxu0 %vm95_vm0, %v83_v8  ;;  %419 = vmatprep.subr.mxu0 %v266_v9 }
  0x3b   :  { %420 = vmatpush3.msra.mxu0 %v266_v9  ;;  %414 = vmatprep.subr.mxu1 %v177_v10 }
  0x3c   :  { %421 = vmatprep.subr.mxu0 %v265_v11  ;;  %415 = vmatpush3.msra.mxu1 %v177_v10 }
  0x3d   :  { %422 = vmatpush3.msra.mxu0 %v265_v11  ;;  %416 = vmatprep.mubr.msk.f32.mxu1 %vm95_vm0, %v82_v3 }
  0x3e   :  { %423 = vmatprep.subr.mxu0 %v264_v12  ;;  %417 = vmatmul.mubr.msk.f32.vlgmr.msra.gmra.mxu1 %vm95_vm0, %v83_v8 }
  0x3f   :  { %424 = vmatpush3.msra.mxu0 %v264_v12  ;;  %427 = vmatprep.mubr.msk.f32.mxu0 %vm95_vm0, %v82_v3 }
  0x40   :  { %425 = vmatprep.subr.mxu0 %v263_v13 }
  0x41   :  { %426 = vmatpush3.msra.mxu0 %v263_v13 }
  0x42   :  { %428 = vmatmul.mubr.msk.f32.vlgmr.msra.gmra.mxu0 %vm95_vm0, %v83_v8 }
  0xfa   :  { %v407_v15 = vpop.f32.mrf.mxu0 }
  0xfb   :  { %v174_v16 = vadd.f32 %v407_v15, %v370_v14 }
  0xfc   :  { %v168_v17 = vpop.f32.mrf.mxu0 }
  0xfd   :  { %350 = vst.msk [vmem:[%s645_s7 + $0x8] sm:$0xff] %vm95_vm0, %v174_v16  ;;  %v169_v19 = vadd.f32 %v370_v14, %v168_v17 }
  0xfe   :  { %v418_v20 = vpop.f32.mrf.mxu1 }
  0xff   :  { %349 = vst.msk [vmem:[%s645_s7] sm:$0xff] %vm95_vm0, %v169_v19  ;;  %v260_v21 = vadd.f32 %v418_v20, %v373_v18 }
 0x100   :  { %v254_v22 = vpop.f32.mrf.mxu1 }
 0x101   :  { %352 = vst.msk [vmem:[%s646_s8 + $0x8] sm:$0xff] %vm95_vm0, %v260_v21  ;;  %v255_v24 = vadd.f32 %v373_v18, %v254_v22 }
 0x102   :  { %v429_v25 = vpop.f32.mrf.mxu0 }
 0x103   :  { %351 = vst.msk [vmem:[%s646_s8] sm:$0xff] %vm95_vm0, %v255_v24  ;;  %v346_v26 = vadd.f32 %v429_v25, %v376_v23 }
 0x104   :  { %v340_v27 = vpop.f32.mrf.mxu0 }
 0x105   :  { %354 = vst.msk [vmem:[%s647_s9 + $0x8] sm:$0xff] %vm95_vm0, %v346_v26  ;;  %v341_v28 = vadd.f32 %v376_v23, %v340_v27 }
 0x107   :  { %353 = vst.msk [vmem:[%s647_s9] sm:$0xff] %vm95_vm0, %v341_v28 }
 0x108   :  { %367 = vsyncpa [#allocation3], 1 }
 0x109   :  { %368 = vsyncpa [#allocation5], 1 }
 0x10a   :  { %369 = vsyncpa [#allocation8], 1 }

// kernel: decoder_layer.8
= control target key start
LH: loop header
LB: loop body
LE: loop exit
PB: predicated region body
PF: predicated region fallthrough
CT: control target
= control target key end

     0   :  { %vm36_vm0 = vcmask 261120   ;;  %s281_s2 = inlined_call_operand.vmem [shape: f32[32,32], index: 2, kind: input, shape index: {}]   ;;  %s282_s0 = inlined_call_operand.vmem [shape: f32[16,32], index: 0, kind: input, shape index: {}]   ;;  %s283_s3 = inlined_call_operand.vmem [shape: f32[1,32], index: 3, kind: input, shape index: {}]   ;;  %s284_s1 = inlined_call_operand.vmem [shape: f32[16,32], index: 1, kind: input, shape index: {}]   ;;  %s285_s4 = inlined_call_operand.vmem [shape: f32[1,32], index: 4, kind: input, shape index: {}]   ;;  %s286_s5 = inlined_call_operand.vmem [shape: f32[1,32], index: 5, kind: input, shape index: {}]   ;;  %s287_s6 = inlined_call_operand.vmem [shape: f32[16,32], index: 6, kind: output, shape index: {}]  }
   0x1   :  { %v28_v0 = vld [vmem:[%s281_s2 + $0x18] sm:$0xff]  ;;  %v27_v1 = vld [vmem:[%s281_s2 + $0x10] sm:$0xff]  ;;  %v23_v2 = vld [vmem:[%s282_s0] sm:$0xff] }
   0x2   :  { %184 = vmatprep.subr.mxu0 %v28_v0  ;;  %v26_v3 = vld [vmem:[%s281_s2 + $0x8] sm:$0xff]  ;;  %192 = vmatprep.mubr.msk.f32.mxu0 %vm36_vm0, %v23_v2  ;;  %v25_v4 = vld [vmem:[%s281_s2] sm:$0xff] }
   0x3   :  { %185 = vmatpush3.msra.mxu0 %v28_v0  ;;  %v24_v5 = vld [vmem:[%s282_s0 + $0x8] sm:$0xff]  ;;  %v173_v7 = vld [vmem:[%s283_s3] ss:$0 sm:$0xff] }
   0x4   :  { %186 = vmatprep.subr.mxu0 %v27_v1  ;;  %v118_v9 = vld [vmem:[%s284_s1] sm:$0xff]  ;;  %v119_v12 = vld [vmem:[%s284_s1 + $0x8] sm:$0xff] }
   0x5   :  { %187 = vmatpush3.msra.mxu0 %v27_v1  ;;  %v176_v34 = vld [vmem:[%s285_s4] ss:$0 sm:$0xff] }
   0x6   :  { %188 = vmatprep.subr.mxu0 %v26_v3  ;;  %v177_v36 = vld [vmem:[%s286_s5] ss:$0 sm:$0xff] }
   0x7   :  { %189 = vmatpush3.msra.mxu0 %v26_v3 }
   0x8   :  { %190 = vmatprep.subr.mxu0 %v25_v4 }
   0x9   :  { %191 = vmatpush3.msra.mxu0 %v25_v4 }
   0xa   :  { %193 = vmatmul.mubr.msk.f32.vlgmr.msra.gmra.mxu0 %vm36_vm0, %v24_v5 }
  0xca   :  { %v194_v6 = vpop.f32.mrf.mxu0 }
  0xcb   :  { %v115_v10 = vadd.f32 %v194_v6, %v173_v7 }
  0xcc   :  { %v109_v8 = vpop.f32.mrf.mxu0 }
  0xcd   :  { %v110_v11 = vadd.f32 %v173_v7, %v109_v8  ;;  %v121_v15 = vadd.f32 %v119_v12, %v115_v10 }
  0xcf   :  { %v120_v13 = vadd.f32 %v118_v9, %v110_v11  ;;  %v127_v16 = vsel %vm36_vm0, %v121_v15, 0.0 }
  0xd1   :  { %v124_v14 = vsel %vm36_vm0, %v120_v13, 0.0 }
  0xd2   :  { %125 = vadd.xlane.f32.xlu0 %v124_v14 }
  0xd6   :  { %128 = vadd.xlane.f32.xlu0 %v127_v16 }
 0x15b   :  { %v126_v17 = vpop.xlane.xlu0 %125 }
 0x15c   :  { %v131_v18 = vmul.f32 0.03125, %v126_v17 }
 0x15e   :  { %v133_v19 = vsub.f32 %v120_v13, %v131_v18 }
 0x15f   :  { %v129_v20 = vpop.xlane.xlu0 %128 }
 0x160   :  { %v132_v21 = vmul.f32 0.03125, %v129_v20  ;;  %v135_v22 = vmul.f32 %v133_v19, %v133_v19 }
 0x162   :  { %v134_v23 = vsub.f32 %v121_v15, %v132_v21  ;;  %v137_v24 = vsel %vm36_vm0, %v135_v22, 0.0 }
 0x163   :  { %138 = vadd.xlane.f32.xlu1 %v137_v24 }
 0x164   :  { %v136_v25 = vmul.f32 %v134_v23, %v134_v23 }
 0x166   :  { %v140_v26 = vsel %vm36_vm0, %v136_v25, 0.0 }
 0x167   :  { %141 = vadd.xlane.f32.xlu1 %v140_v26 }
 0x1ec   :  { %v139_v27 = vpop.xlane.xlu1 %138 }
 0x1ed   :  { %v143_v28 = vmul.f32 0.03125, %v139_v27 }
 0x1ef   :  { %v145_v29 = vadd.f32 1e-05, %v143_v28 }
 0x1f0   :  { %v142_v30 = vpop.xlane.xlu1 %141 }
 0x1f1   :  { %195 = vrsqrt.f32 %v145_v29  ;;  %v144_v31 = vmul.f32 0.03125, %v142_v30 }
 0x1f3   :  { %v146_v32 = vadd.f32 1e-05, %v144_v31 }
 0x1f5   :  { %197 = vrsqrt.f32 %v146_v32 }
 0x1fe   :  { %v196_v33 = vpop.eup %195 }
 0x1ff   :  { %v149_v35 = vmul.f32 %v196_v33, %v133_v19 }
 0x201   :  { %v157_v37 = vmul.f32 %v176_v34, %v149_v35 }
 0x202   :  { %v198_v38 = vpop.eup %197 }
 0x203   :  { %v165_v39 = vadd.f32 %v177_v36, %v157_v37  ;;  %v150_v40 = vmul.f32 %v198_v38, %v134_v23 }
 0x205   :  { %167 = vst.msk [vmem:[%s287_s6] sm:$0xff] %vm36_vm0, %v165_v39  ;;  %v158_v41 = vmul.f32 %v176_v34, %v150_v40 }
 0x207   :  { %v166_v42 = vadd.f32 %v177_v36, %v158_v41 }
 0x209   :  { %168 = vst.msk [vmem:[%s287_s6 + $0x8] sm:$0xff] %vm36_vm0, %v166_v42 }

// kernel: decoder_layer.9
= control target key start
LH: loop header
LB: loop body
LE: loop exit
PB: predicated region body
PF: predicated region fallthrough
CT: control target
= control target key end

     0   :  { %vm45_vm0 = vcmask 261120   ;;  %s527_s2 = inlined_call_operand.vmem [shape: f32[32,32], index: 2, kind: input, shape index: {}]   ;;  %s528_s4 = inlined_call_operand.vmem [shape: f32[32,32], index: 4, kind: input, shape index: {}]   ;;  %s529_s0 = inlined_call_operand.vmem [shape: f32[16,32], index: 0, kind: input, shape index: {}]   ;;  %s530_s6 = inlined_call_operand.vmem [shape: f32[32,32], index: 6, kind: input, shape index: {}]   ;;  %s531_s1 = inlined_call_operand.vmem [shape: f32[16,32], index: 1, kind: input, shape index: {}]   ;;  %s532_s3 = inlined_call_operand.vmem [shape: f32[1,32], index: 3, kind: input, shape index: {}]   ;;  %s533_s5 = inlined_call_operand.vmem [shape: f32[1,32], index: 5, kind: input, shape index: {}]   ;;  %s534_s8 = inlined_call_operand.vmem [shape: f32[16,32], index: 8, kind: output, shape index: {0}]   ;;  %s535_s7 = inlined_call_operand.vmem [shape: f32[1,32], index: 7, kind: input, shape index: {}]   ;;  %s536_s9 = inlined_call_operand.vmem [shape: f32[16,32], index: 9, kind: output, shape index: {1}]   ;;  %s537_s10 = inlined_call_operand.vmem [shape: f32[16,32], index: 10, kind: output, shape index: {2}]  }
   0x1   :  { %v37_v0 = vld [vmem:[%s527_s2 + $0x18] sm:$0xff]  ;;  %v36_v1 = vld [vmem:[%s527_s2 + $0x10] sm:$0xff]  ;;  %v32_v3 = vld [vmem:[%s529_s0] sm:$0xff] }
   0x2   :  { %352 = vmatprep.subr.mxu0 %v37_v0  ;;  %v130_v2 = vld [vmem:[%s528_s4 + $0x18] sm:$0xff]  ;;  %v35_v4 = vld [vmem:[%s527_s2 + $0x8] sm:$0xff]  ;;  %v129_v5 = vld [vmem:[%s528_s4 + $0x10] sm:$0xff]  ;;  %360 = vmatprep.mubr.msk.f32.mxu0 %vm45_vm0, %v32_v3 }
   0x3   :  { %353 = vmatpush3.msra.mxu0 %v37_v0  ;;  %363 = vmatprep.subr.mxu1 %v130_v2  ;;  %v34_v6 = vld [vmem:[%s527_s2] sm:$0xff]  ;;  %v128_v7 = vld [vmem:[%s528_s4 + $0x8] sm:$0xff]  ;;  %v218_v9 = vld [vmem:[%s530_s6 + $0x18] sm:$0xff] }
   0x4   :  { %354 = vmatprep.subr.mxu0 %v36_v1  ;;  %364 = vmatpush3.msra.mxu1 %v130_v2  ;;  %v33_v8 = vld [vmem:[%s529_s0 + $0x8] sm:$0xff]  ;;  %v127_v10 = vld [vmem:[%s528_s4] sm:$0xff]  ;;  %v217_v11 = vld [vmem:[%s530_s6 + $0x10] sm:$0xff] }
   0x5   :  { %355 = vmatpush3.msra.mxu0 %v36_v1  ;;  %365 = vmatprep.subr.mxu1 %v129_v5  ;;  %v216_v12 = vld [vmem:[%s530_s6 + $0x8] sm:$0xff]  ;;  %v213_v13 = vld [vmem:[%s531_s1] sm:$0xff] }
   0x6   :  { %356 = vmatprep.subr.mxu0 %v35_v4  ;;  %366 = vmatpush3.msra.mxu1 %v129_v5  ;;  %v215_v14 = vld [vmem:[%s530_s6] sm:$0xff]  ;;  %v214_v15 = vld [vmem:[%s531_s1 + $0x8] sm:$0xff] }
   0x7   :  { %357 = vmatpush3.msra.mxu0 %v35_v4  ;;  %367 = vmatprep.subr.mxu1 %v128_v7  ;;  %v325_v16 = vld [vmem:[%s532_s3] ss:$0 sm:$0xff] }
   0x8   :  { %358 = vmatprep.subr.mxu0 %v34_v6  ;;  %368 = vmatpush3.msra.mxu1 %v128_v7  ;;  %v328_v20 = vld [vmem:[%s533_s5] ss:$0 sm:$0xff] }
   0x9   :  { %359 = vmatpush3.msra.mxu0 %v34_v6  ;;  %369 = vmatprep.subr.mxu1 %v127_v10  ;;  %v331_v25 = vld [vmem:[%s535_s7] ss:$0 sm:$0xff] }
   0xa   :  { %361 = vmatmul.mubr.msk.f32.vlgmr.msra.gmra.mxu0 %vm45_vm0, %v33_v8  ;;  %374 = vmatprep.subr.mxu0 %v218_v9 }
   0xb   :  { %375 = vmatpush3.msra.mxu0 %v218_v9  ;;  %370 = vmatpush3.msra.mxu1 %v127_v10 }
   0xc   :  { %376 = vmatprep.subr.mxu0 %v217_v11  ;;  %371 = vmatprep.mubr.msk.f32.mxu1 %vm45_vm0, %v32_v3 }
   0xd   :  { %377 = vmatpush3.msra.mxu0 %v217_v11  ;;  %372 = vmatmul.mubr.msk.f32.vlgmr.msra.gmra.mxu1 %vm45_vm0, %v33_v8 }
   0xe   :  { %378 = vmatprep.subr.mxu0 %v216_v12  ;;  %382 = vmatprep.mubr.msk.f32.mxu0 %vm45_vm0, %v213_v13 }
   0xf   :  { %379 = vmatpush3.msra.mxu0 %v216_v12 }
  0x10   :  { %380 = vmatprep.subr.mxu0 %v215_v14 }
  0x11   :  { %381 = vmatpush3.msra.mxu0 %v215_v14 }
  0x12   :  { %383 = vmatmul.mubr.msk.f32.vlgmr.msra.gmra.mxu0 %vm45_vm0, %v214_v15 }
  0xca   :  { %v362_v17 = vpop.f32.mrf.mxu0 }
  0xcb   :  { %v124_v18 = vadd.f32 %v362_v17, %v325_v16 }
  0xcc   :  { %v118_v19 = vpop.f32.mrf.mxu0 }
  0xcd   :  { %308 = vst.msk [vmem:[%s534_s8 + $0x8] sm:$0xff] %vm45_vm0, %v124_v18  ;;  %v119_v21 = vadd.f32 %v325_v16, %v118_v19  ;;  %v373_v22 = vpop.f32.mrf.mxu1 }
  0xce   :  { %v210_v23 = vadd.f32 %v373_v22, %v328_v20 }
  0xcf   :  { %307 = vst.msk [vmem:[%s534_s8] sm:$0xff] %vm45_vm0, %v119_v21  ;;  %v204_v24 = vpop.f32.mrf.mxu1 }
  0xd0   :  { %310 = vst.msk [vmem:[%s536_s9 + $0x8] sm:$0xff] %vm45_vm0, %v210_v23  ;;  %v205_v26 = vadd.f32 %v328_v20, %v204_v24 }
  0xd2   :  { %v384_v27 = vpop.f32.mrf.mxu0  ;;  %309 = vst.msk [vmem:[%s536_s9] sm:$0xff] %vm45_vm0, %v205_v26 }
  0xd3   :  { %v304_v28 = vadd.f32 %v384_v27, %v331_v25 }
  0xd4   :  { %v298_v29 = vpop.f32.mrf.mxu0 }
  0xd5   :  { %312 = vst.msk [vmem:[%s537_s10 + $0x8] sm:$0xff] %vm45_vm0, %v304_v28  ;;  %v299_v30 = vadd.f32 %v331_v25, %v298_v29 }
  0xd7   :  { %311 = vst.msk [vmem:[%s537_s10] sm:$0xff] %vm45_vm0, %v299_v30 }

// kernel: decoder_layer.7
= control target key start
LH: loop header
LB: loop body
LE: loop exit
PB: predicated region body
PF: predicated region fallthrough
CT: control target
= control target key end

     0   :  { %vm41_vm0 = vcmask 64512   ;;  %v1561_v2 = vmov 0.0   ;;  %vm1562_vm1 = vmmov 0   ;;  %s1806_s0 = inlined_call_operand.vmem [shape: f32[8,8,8], index: 0, kind: input, shape index: {}]   ;;  %s1807_s1 = inlined_call_operand.vmem [shape: f32[8,8,8], index: 1, kind: input, shape index: {}]   ;;  %s1808_s2 = inlined_call_operand.vmem [shape: f32[8,8,8], index: 2, kind: input, shape index: {}]   ;;  %s1809_s3 = inlined_call_operand.vmem [shape: f32[8,8,8], index: 3, kind: output, shape index: {0}]   ;;  %s1810_s4 = inlined_call_operand.hbm [shape: f32[8,8,8], index: 4, kind: output, shape index: {1}]  }
   0x1   :  { %v25_v0 = vld [vmem:[%s1807_s1] sm:$0xff]  ;;  %v26_v1 = vld [vmem:[%s1807_s1 + $0x8] sm:$0xff]  ;;  %1422 = vmatprep.subr.mxu0 %v1561_v2  ;;  %1424 = vmatprep.mubr.msk.f32.mxu0 %vm1562_vm1, %v1561_v2  ;;  %v27_v4 = vld [vmem:[%s1807_s1 + $0x10] sm:$0xff] }
   0x2   :  { %1423 = vmatpush3.xpose.msk.msra.mxu0 %vm41_vm0, %v25_v0  ;;  %1427 = vmatprep.subr.mxu1 %v1561_v2  ;;  %v17_v3 = vld [vmem:[%s1806_s0] sm:$0xff]  ;;  %v18_v5 = vld [vmem:[%s1806_s0 + $0x8] sm:$0xff]  ;;  %v28_v6 = vld [vmem:[%s1807_s1 + $0x18] sm:$0xff] }
   0x3   :  { %1428 = vmatpush3.xpose.msk.msra.mxu1 %vm41_vm0, %v26_v1  ;;  %1432 = vmatprep.subr.mxu0 %v1561_v2 }
   0x4   :  { %1429 = vmatprep.mubr.msk.f32.mxu1 %vm1562_vm1, %v1561_v2  ;;  %1437 = vmatprep.subr.mxu1 %v1561_v2 }
   0x5   :  { %1425 = vmatmul.mubr.msk.f32.vlgmr.msra.gmra.mxu0 %vm41_vm0, %v17_v3 }
   0x6   :  { %10 = vsyncpa [#allocation3], 0  ;;  %1433 = vmatpush3.xpose.msk.msra.mxu0 %vm41_vm0, %v27_v4  ;;  %1430 = vmatmul.mubr.msk.f32.vlgmr.msra.gmra.mxu1 %vm41_vm0, %v18_v5  ;;  %v19_v7 = vld [vmem:[%s1806_s0 + $0x10] sm:$0xff]  ;;  %v29_v8 = vld [vmem:[%s1807_s1 + $0x20] sm:$0xff] }
   0x7   :  { %1434 = vmatprep.mubr.msk.f32.mxu0 %vm1562_vm1, %v1561_v2  ;;  %1438 = vmatpush3.xpose.msk.msra.mxu1 %vm41_vm0, %v28_v6  ;;  %v20_v9 = vld [vmem:[%s1806_s0 + $0x18] sm:$0xff]  ;;  %v30_v10 = vld [vmem:[%s1807_s1 + $0x28] sm:$0xff]  ;;  %v21_v11 = vld [vmem:[%s1806_s0 + $0x20] sm:$0xff] }
   0x8   :  { %1442 = vmatprep.subr.mxu0 %v1561_v2  ;;  %1439 = vmatprep.mubr.msk.f32.mxu1 %vm1562_vm1, %v1561_v2  ;;  %v31_v12 = vld [vmem:[%s1807_s1 + $0x30] sm:$0xff]  ;;  %v22_v13 = vld [vmem:[%s1806_s0 + $0x28] sm:$0xff]  ;;  %v32_v14 = vld [vmem:[%s1807_s1 + $0x38] sm:$0xff] }
   0x9   :  { %1435 = vmatmul.mubr.msk.f32.vlgmr.msra.gmra.mxu0 %vm41_vm0, %v19_v7  ;;  %1447 = vmatprep.subr.mxu1 %v1561_v2  ;;  %v23_v15 = vld [vmem:[%s1806_s0 + $0x30] sm:$0xff]  ;;  %v24_v16 = vld [vmem:[%s1806_s0 + $0x38] sm:$0xff] }
   0xa   :  { %1443 = vmatpush3.xpose.msk.msra.mxu0 %vm41_vm0, %v29_v8  ;;  %1440 = vmatmul.mubr.msk.f32.vlgmr.msra.gmra.mxu1 %vm41_vm0, %v20_v9 }
   0xb   :  { %1444 = vmatprep.mubr.msk.f32.mxu0 %vm1562_vm1, %v1561_v2  ;;  %1448 = vmatpush3.xpose.msk.msra.mxu1 %vm41_vm0, %v30_v10 }
   0xc   :  { %1452 = vmatprep.subr.mxu0 %v1561_v2  ;;  %1449 = vmatprep.mubr.msk.f32.mxu1 %vm1562_vm1, %v1561_v2 }
   0xd   :  { %1445 = vmatmul.mubr.msk.f32.vlgmr.msra.gmra.mxu0 %vm41_vm0, %v21_v11  ;;  %1457 = vmatprep.subr.mxu1 %v1561_v2 }
   0xe   :  { %1453 = vmatpush3.xpose.msk.msra.mxu0 %vm41_vm0, %v31_v12  ;;  %1450 = vmatmul.mubr.msk.f32.vlgmr.msra.gmra.mxu1 %vm41_vm0, %v22_v13 }
   0xf   :  { %1454 = vmatprep.mubr.msk.f32.mxu0 %vm1562_vm1, %v1561_v2  ;;  %1458 = vmatpush3.xpose.msk.msra.mxu1 %vm41_vm0, %v32_v14 }
  0x10   :  { %1459 = vmatprep.mubr.msk.f32.mxu1 %vm1562_vm1, %v1561_v2  ;;  %1462 = vmatprep.subr.mxu0 %v1561_v2 }
  0x11   :  { %1455 = vmatmul.mubr.msk.f32.vlgmr.msra.gmra.mxu0 %vm41_vm0, %v23_v15  ;;  %1467 = vmatprep.subr.mxu1 %v1561_v2 }
  0x12   :  { %1460 = vmatmul.mubr.msk.f32.vlgmr.msra.gmra.mxu1 %vm41_vm0, %v24_v16  ;;  %1464 = vmatprep.mubr.msk.f32.mxu0 %vm1562_vm1, %v1561_v2 }
  0x13   :  { %1469 = vmatprep.mubr.msk.f32.mxu1 %vm1562_vm1, %v1561_v2 }
  0xc5   :  { %v114_v17 = vpop.f32.mrf.mxu0 }
  0xc6   :  { %v650_v18 = vmul.f32 0.70710677, %v114_v17  ;;  %v190_v19 = vpop.f32.mrf.mxu1 }
  0xc7   :  { %v1426_v20 = vpop.f32.mrf.mxu0  ;;  %v651_v21 = vmul.f32 0.70710677, %v190_v19 }
  0xc8   :  { %v658_v22 = vsel %vm41_vm0, %v650_v18, -inf  ;;  %v1431_v23 = vpop.f32.mrf.mxu1 }
  0xc9   :  { %659 = vmax.xlane.f32.xlu0 %v658_v22  ;;  %v266_v24 = vpop.f32.mrf.mxu0  ;;  %v661_v27 = vsel %vm41_vm0, %v651_v21, -inf }
  0xca   :  { %v652_v25 = vmul.f32 0.70710677, %v266_v24  ;;  %v342_v26 = vpop.f32.mrf.mxu1 }
  0xcb   :  { %v1436_v28 = vpop.f32.mrf.mxu0  ;;  %v653_v29 = vmul.f32 0.70710677, %v342_v26  ;;  %v33_v26 = vld [vmem:[%s1808_s2] sm:$0xff] }
  0xcc   :  { %v664_v30 = vsel %vm41_vm0, %v652_v25, -inf  ;;  %v1441_v31 = vpop.f32.mrf.mxu1  ;;  %1463 = vmatpush3.msra.mxu0 %v33_v26 }
  0xcd   :  { %662 = vmax.xlane.f32.xlu0 %v661_v27  ;;  %665 = vmax.xlane.f32.xlu1 %v664_v30  ;;  %v418_v32 = vpop.f32.mrf.mxu0  ;;  %v667_v35 = vsel %vm41_vm0, %v653_v29, -inf  ;;  %v34_v27 = vld [vmem:[%s1808_s2 + $0x8] sm:$0xff] }
  0xce   :  { %v654_v33 = vmul.f32 0.70710677, %v418_v32  ;;  %v494_v34 = vpop.f32.mrf.mxu1  ;;  %1472 = vmatprep.subr.mxu0 %v1561_v2  ;;  %1468 = vmatpush3.msra.mxu1 %v34_v27 }
  0xcf   :  { %v1446_v36 = vpop.f32.mrf.mxu0  ;;  %v655_v37 = vmul.f32 0.70710677, %v494_v34  ;;  %1477 = vmatprep.subr.mxu1 %v1561_v2 }
  0xd0   :  { %v670_v38 = vsel %vm41_vm0, %v654_v33, -inf  ;;  %v1451_v39 = vpop.f32.mrf.mxu1 }
  0xd1   :  { %668 = vmax.xlane.f32.xlu1 %v667_v35  ;;  %671 = vmax.xlane.f32.xlu0 %v670_v38  ;;  %v570_v40 = vpop.f32.mrf.mxu0  ;;  %v673_v43 = vsel %vm41_vm0, %v655_v37, -inf }
  0xd2   :  { %v656_v41 = vmul.f32 0.70710677, %v570_v40  ;;  %v646_v42 = vpop.f32.mrf.mxu1 }
  0xd3   :  { %v657_v44 = vmul.f32 0.70710677, %v646_v42  ;;  %v1456_v45 = vpop.f32.mrf.mxu0  ;;  %v36_v42 = vld [vmem:[%s1808_s2 + $0x18] sm:$0xff] }
  0xd4   :  { %v676_v46 = vsel %vm41_vm0, %v656_v41, -inf  ;;  %v1461_v47 = vpop.f32.mrf.mxu1 }
  0xd5   :  { %674 = vmax.xlane.f32.xlu1 %v673_v43  ;;  %677 = vmax.xlane.f32.xlu0 %v676_v46  ;;  %v679_v48 = vsel %vm41_vm0, %v657_v44, -inf }
  0xd9   :  { %680 = vmax.xlane.f32.xlu1 %v679_v48  ;;  %v38_v48 = vld [vmem:[%s1808_s2 + $0x28] sm:$0xff] }
 0x152   :  { %v660_v49 = vpop.xlane.xlu0 %659 }
 0x153   :  { %v682_v50 = vsub.f32 %v650_v18, %v660_v49 }
 0x155   :  { %v690_v51 = vmul.f32 1.442695, %v682_v50  ;;  %v39_v50 = vld [vmem:[%s1808_s2 + $0x30] sm:$0xff] }
 0x156   :  { %v663_v52 = vpop.xlane.xlu0 %662  ;;  %v666_v53 = vpop.xlane.xlu1 %665 }
 0x157   :  { %1507 = vpow2.f32 %v690_v51  ;;  %v683_v54 = vsub.f32 %v651_v21, %v663_v52  ;;  %v684_v55 = vsub.f32 %v652_v25, %v666_v53 }
 0x159   :  { %v692_v56 = vmul.f32 1.442695, %v683_v54  ;;  %v694_v57 = vmul.f32 1.442695, %v684_v55  ;;  %v40_v54 = vld [vmem:[%s1808_s2 + $0x38] sm:$0xff] }
 0x15a   :  { %v669_v58 = vpop.xlane.xlu1 %668  ;;  %v672_v59 = vpop.xlane.xlu0 %671 }
 0x15b   :  { %1509 = vpow2.f32 %v692_v56  ;;  %v685_v60 = vsub.f32 %v653_v29, %v669_v58  ;;  %v686_v61 = vsub.f32 %v654_v33, %v672_v59 }
 0x15c   :  { %1511 = vpow2.f32 %v694_v57 }
 0x15d   :  { %v696_v62 = vmul.f32 1.442695, %v685_v60  ;;  %v698_v63 = vmul.f32 1.442695, %v686_v61 }
 0x15e   :  { %v675_v0 = vpop.xlane.xlu1 %674  ;;  %v678_v1 = vpop.xlane.xlu0 %677 }
 0x15f   :  { %1513 = vpow2.f32 %v696_v62  ;;  %v687_v3 = vsub.f32 %v655_v37, %v675_v0  ;;  %v688_v4 = vsub.f32 %v656_v41, %v678_v1  ;;  %v35_v37 = vld [vmem:[%s1808_s2 + $0x10] sm:$0xff] }
 0x160   :  { %1515 = vpow2.f32 %v698_v63 }
 0x161   :  { %v700_v5 = vmul.f32 1.442695, %v687_v3  ;;  %v702_v6 = vmul.f32 1.442695, %v688_v4 }
 0x162   :  { %v681_v7 = vpop.xlane.xlu1 %680 }
 0x163   :  { %1517 = vpow2.f32 %v700_v5  ;;  %v689_v8 = vsub.f32 %v657_v44, %v681_v7  ;;  %v37_v44 = vld [vmem:[%s1808_s2 + $0x20] sm:$0xff]  ;;  %s1563_s2 = smov [#allocation2]  }
 0x164   :  { %v1508_v9 = vpop.eup %1507  ;;  %1519 = vpow2.f32 %v702_v6  ;;  %s1353_s9 = sshll.u32 %s1563_s2, 4  ;;  %s1354_s9 = int_to_ptr.vmem [resolvable:$true] %s1353_s9 }
 0x165   :  { %v704_v10 = vmul.f32 1.442695, %v689_v8  ;;  %v706_v11 = vsel %vm41_vm0, %v1508_v9, 0.0  ;;  %s1539_s10 = scalar_lea.vmem %s1354_s9, 1024  ;;  %p1544_p1 = scmp.lt.s32.totalorder %s1354_s9, %s1354_s9 }
 0x166   :  { %707 = vadd.xlane.f32.xlu0 %v706_v11  ;;  %p1540_p0 = scmp.ne.s32.totalorder %s1354_s9, %s1539_s10  ;;  %p1545_p2 = scmp.lt.s32.totalorder %s1539_s10, %s1539_s10 }
 0x167   :  { %1521 = vpow2.f32 %v704_v10 }
 0x168   :  { %v1510_v12 = vpop.eup %1509  ;;  %p1546_p3 = por %p1545_p2, %p1544_p1 }
 0x169   :  { %v1512_v13 = vpop.eup %1511  ;;  %v709_v14 = vsel %vm41_vm0, %v1510_v12, 0.0 }
 0x16a   :  { %710 = vadd.xlane.f32.xlu1 %v709_v14  ;;  %v712_v15 = vsel %vm41_vm0, %v1512_v13, 0.0  ;;  %p1547_p4 = pnand %p1546_p3, %p1540_p0 }
 0x16b   :  { %713 = vadd.xlane.f32.xlu0 %v712_v15 }
 0x16c   :  { %v1514_v16 = vpop.eup %1513 }
 0x16d   :  { %v1516_v17 = vpop.eup %1515  ;;  %v715_v18 = vsel %vm41_vm0, %v1514_v16, 0.0 }
 0x16e   :  { %716 = vadd.xlane.f32.xlu1 %v715_v18  ;;  %v718_v19 = vsel %vm41_vm0, %v1516_v17, 0.0 }
 0x16f   :  { %719 = vadd.xlane.f32.xlu0 %v718_v19 }
 0x170   :  { %v1698_v20 = vpop.eup %1517 }
 0x171   :  { %v1700_v21 = vpop.eup %1519  ;;  %v721_v22 = vsel %vm41_vm0, %v1698_v20, 0.0 }
 0x172   :  { %722 = vadd.xlane.f32.xlu1 %v721_v22  ;;  %v724_v23 = vsel %vm41_vm0, %v1700_v21, 0.0 }
 0x173   :  { %725 = vadd.xlane.f32.xlu0 %v724_v23 }
 0x174   :  { %v1706_v24 = vpop.eup %1521 }
 0x175   :  { %v727_v25 = vsel %vm41_vm0, %v1706_v24, 0.0 }
 0x176   :  { %728 = vadd.xlane.f32.xlu1 %v727_v25 }
 0x1ef   :  { %v708_v28 = vpop.xlane.xlu0 %707 }
 0x1f0   :  { %1523 = vrcp.f32 %v708_v28 }
 0x1f3   :  { %v711_v29 = vpop.xlane.xlu1 %710 }
 0x1f4   :  { %1525 = vrcp.f32 %v711_v29  ;;  %v714_v30 = vpop.xlane.xlu0 %713 }
 0x1f5   :  { %1527 = vrcp.f32 %v714_v30 }
 0x1f7   :  { %v717_v31 = vpop.xlane.xlu1 %716 }
 0x1f8   :  { %1529 = vrcp.f32 %v717_v31  ;;  %v720_v32 = vpop.xlane.xlu0 %719 }
 0x1f9   :  { %1531 = vrcp.f32 %v720_v32 }
 0x1fb   :  { %v723_v33 = vpop.xlane.xlu1 %722 }
 0x1fc   :  { %1533 = vrcp.f32 %v723_v33  ;;  %v726_v34 = vpop.xlane.xlu0 %725 }
 0x1fd   :  { %v1524_v35 = vpop.eup %1523  ;;  %1535 = vrcp.f32 %v726_v34 }
 0x1fe   :  { %v738_v36 = vmul.f32 %v1524_v35, %v1508_v9 }
 0x1ff   :  { %v729_v38 = vpop.xlane.xlu1 %728 }
 0x200   :  { %1537 = vrcp.f32 %v729_v38  ;;  %746 = vst.msk [vmem:[#allocation2] sm:$0xff] %vm41_vm0, %v738_v36  ;;  %1465 = vmatmul.mubr.msk.f32.vlgmr.msra.gmra.mxu0 %vm41_vm0, %v738_v36 }
 0x201   :  { %v1526_v39 = vpop.eup %1525  ;;  %1473 = vmatpush3.msra.mxu0 %v35_v37  ;;  %1474 = vmatprep.mubr.msk.f32.mxu0 %vm1562_vm1, %v1561_v2 }
 0x202   :  { %v1528_v40 = vpop.eup %1527  ;;  %v739_v41 = vmul.f32 %v1526_v39, %v1510_v12  ;;  %1482 = vmatprep.subr.mxu0 %v1561_v2 }
 0x203   :  { %v740_v43 = vmul.f32 %v1528_v40, %v1512_v13 }
 0x204   :  { %747 = vst.msk [vmem:[#allocation2 + $0x8] sm:$0xff] %vm41_vm0, %v739_v41  ;;  %1470 = vmatmul.mubr.msk.f32.vlgmr.msra.gmra.mxu1 %vm41_vm0, %v739_v41 }
 0x205   :  { %v1530_v45 = vpop.eup %1529  ;;  %748 = vst.msk [vmem:[#allocation2 + $0x10] sm:$0xff] %vm41_vm0, %v740_v43  ;;  %1475 = vmatmul.mubr.msk.f32.vlgmr.msra.gmra.mxu0 %vm41_vm0, %v740_v43  ;;  %1478 = vmatpush3.msra.mxu1 %v36_v42 }
 0x206   :  { %v1532_v46 = vpop.eup %1531  ;;  %1479 = vmatprep.mubr.msk.f32.mxu1 %vm1562_vm1, %v1561_v2  ;;  %1483 = vmatpush3.msra.mxu0 %v37_v44  ;;  %v741_v47 = vmul.f32 %v1530_v45, %v1514_v16 }
 0x207   :  { %1484 = vmatprep.mubr.msk.f32.mxu0 %vm1562_vm1, %v1561_v2  ;;  %v742_v49 = vmul.f32 %v1532_v46, %v1516_v17  ;;  %1487 = vmatprep.subr.mxu1 %v1561_v2 }
 0x208   :  { %749 = vst.msk [vmem:[#allocation2 + $0x18] sm:$0xff] %vm41_vm0, %v741_v47  ;;  %1480 = vmatmul.mubr.msk.f32.vlgmr.msra.gmra.mxu1 %vm41_vm0, %v741_v47  ;;  %1492 = vmatprep.subr.mxu0 %v1561_v2 }
 0x209   :  { %v1534_v51 = vpop.eup %1533  ;;  %750 = vst.msk [vmem:[#allocation2 + $0x20] sm:$0xff] %vm41_vm0, %v742_v49  ;;  %1485 = vmatmul.mubr.msk.f32.vlgmr.msra.gmra.mxu0 %vm41_vm0, %v742_v49  ;;  %1488 = vmatpush3.msra.mxu1 %v38_v48 }
 0x20a   :  { %v1536_v52 = vpop.eup %1535  ;;  %1489 = vmatprep.mubr.msk.f32.mxu1 %vm1562_vm1, %v1561_v2  ;;  %1493 = vmatpush3.msra.mxu0 %v39_v50  ;;  %v743_v53 = vmul.f32 %v1534_v51, %v1698_v20 }
 0x20b   :  { %1494 = vmatprep.mubr.msk.f32.mxu0 %vm1562_vm1, %v1561_v2  ;;  %v744_v55 = vmul.f32 %v1536_v52, %v1700_v21  ;;  %1497 = vmatprep.subr.mxu1 %v1561_v2 }
 0x20c   :  { %751 = vst.msk [vmem:[#allocation2 + $0x28] sm:$0xff] %vm41_vm0, %v743_v53  ;;  %1490 = vmatmul.mubr.msk.f32.vlgmr.msra.gmra.mxu1 %vm41_vm0, %v743_v53 }
 0x20d   :  { %v1538_v56 = vpop.eup %1537  ;;  %752 = vst.msk [vmem:[#allocation2 + $0x30] sm:$0xff] %vm41_vm0, %v744_v55  ;;  %1495 = vmatmul.mubr.msk.f32.vlgmr.msra.gmra.mxu0 %vm41_vm0, %v744_v55  ;;  %1498 = vmatpush3.msra.mxu1 %v40_v54 }
 0x20e   :  { %1499 = vmatprep.mubr.msk.f32.mxu1 %vm1562_vm1, %v1561_v2  ;;  %v745_v57 = vmul.f32 %v1538_v56, %v1706_v24 }
 0x210   :  { %753 = vst.msk [vmem:[#allocation2 + $0x38] sm:$0xff] %vm41_vm0, %v745_v57  ;;  %1500 = vmatmul.mubr.msk.f32.vlgmr.msra.gmra.mxu1 %vm41_vm0, %v745_v57 }
 0x211   :  { %1550 = shalt.err (!%p1547_p4)
}
 0x212   :  { %s1564_s11 = smov 128   ;;  %s1565_s12 = smov 8  }
 0x213   :  { %1359 = dma.vmem_to_hbm [thread:$0]  %s1354_s9, 1024, %s1810_s4, [#allocation3], %s1564_s11, %s1564_s11, %s1565_s12  }
 0x2c0   :  { %v823_v2 = vpop.f32.mrf.mxu0 }
 0x2c1   :  { %1338 = vst.msk [vmem:[%s1809_s3] sm:$0xff] %vm41_vm0, %v823_v2 }
 0x2c2   :  { %v1466_v58 = vpop.f32.mrf.mxu0 }
 0x2c4   :  { %v896_v59 = vpop.f32.mrf.mxu1 }
 0x2c5   :  { %1339 = vst.msk [vmem:[%s1809_s3 + $0x8] sm:$0xff] %vm41_vm0, %v896_v59  ;;  %v969_v60 = vpop.f32.mrf.mxu0 }
 0x2c6   :  { %1340 = vst.msk [vmem:[%s1809_s3 + $0x10] sm:$0xff] %vm41_vm0, %v969_v60  ;;  %v1471_v61 = vpop.f32.mrf.mxu1 }
 0x2c7   :  { %v1476_v62 = vpop.f32.mrf.mxu0 }
 0x2c8   :  { %v1042_v63 = vpop.f32.mrf.mxu1 }
 0x2c9   :  { %1341 = vst.msk [vmem:[%s1809_s3 + $0x18] sm:$0xff] %vm41_vm0, %v1042_v63  ;;  %v1115_v0 = vpop.f32.mrf.mxu0 }
 0x2ca   :  { %1342 = vst.msk [vmem:[%s1809_s3 + $0x20] sm:$0xff] %vm41_vm0, %v1115_v0  ;;  %v1481_v1 = vpop.f32.mrf.mxu1 }
 0x2cb   :  { %v1486_v3 = vpop.f32.mrf.mxu0 }
 0x2cc   :  { %v1188_v4 = vpop.f32.mrf.mxu1 }
 0x2cd   :  { %1343 = vst.msk [vmem:[%s1809_s3 + $0x28] sm:$0xff] %vm41_vm0, %v1188_v4  ;;  %v1261_v5 = vpop.f32.mrf.mxu0 }
 0x2ce   :  { %1344 = vst.msk [vmem:[%s1809_s3 + $0x30] sm:$0xff] %vm41_vm0, %v1261_v5  ;;  %v1491_v6 = vpop.f32.mrf.mxu1 }
 0x2cf   :  { %v1496_v7 = vpop.f32.mrf.mxu0 }
 0x2d0   :  { %v1334_v8 = vpop.f32.mrf.mxu1 }
 0x2d1   :  { %1345 = vst.msk [vmem:[%s1809_s3 + $0x38] sm:$0xff] %vm41_vm0, %v1334_v8 }
 0x2d2   :  { %v1501_v9 = vpop.f32.mrf.mxu1 }
 0x2d3   :  { %1559 = dma.done.wait [#allocation3], 1024  }
 0x2d4   :  { %1560 = vsyncadd [#allocation3], 4294966272 }
 0x2d5   :  { %1365 = vsyncpa [#allocation3], 1 }

// kernel: decoder_layer.11
= control target key start
LH: loop header
LB: loop body
LE: loop exit
PB: predicated region body
PF: predicated region fallthrough
CT: control target
= control target key end

     0   :  { %vm55_vm0 = vcmask 261120   ;;  %s716_s0 = inlined_call_operand.vmem [shape: f32[16,32], index: 0, kind: input, shape index: {}]   ;;  %s717_s1 = inlined_call_operand.vmem [shape: f32[16,32], index: 1, kind: input, shape index: {}]   ;;  %s718_s2 = inlined_call_operand.vmem [shape: f32[32,32], index: 2, kind: input, shape index: {}]   ;;  %s719_s3 = inlined_call_operand.vmem [shape: f32[1,32], index: 3, kind: input, shape index: {}]   ;;  %s720_s4 = inlined_call_operand.vmem [shape: f32[1,32], index: 4, kind: input, shape index: {}]   ;;  %s721_s5 = inlined_call_operand.vmem [shape: f32[1,32], index: 5, kind: input, shape index: {}]   ;;  %s722_s6 = inlined_call_operand.vmem [shape: f32[32,64], index: 6, kind: input, shape index: {}]   ;;  %s723_s7 = inlined_call_operand.vmem [shape: f32[1,64], index: 7, kind: input, shape index: {}]   ;;  %s724_s8 = inlined_call_operand.vmem [shape: f32[64,32], index: 8, kind: input, shape index: {}]   ;;  %s725_s9 = inlined_call_operand.vmem [shape: f32[1,32], index: 9, kind: input, shape index: {}]   ;;  %s726_s10 = inlined_call_operand.vmem [shape: f32[1,32], index: 10, kind: input, shape index: {}]   ;;  %s727_s11 = inlined_call_operand.vmem [shape: f32[1,32], index: 11, kind: input, shape index: {}]   ;;  %s728_s12 = inlined_call_operand.hbm [shape: f32[16,32], index: 12, kind: output, shape index: {}]  }
   0x1   :  { %v47_v0 = vld [vmem:[%s718_s2 + $0x18] sm:$0xff]  ;;  %v46_v1 = vld [vmem:[%s718_s2 + $0x10] sm:$0xff]  ;;  %v42_v2 = vld [vmem:[%s716_s0] sm:$0xff] }
   0x2   :  { %476 = vmatprep.subr.mxu1 %v47_v0  ;;  %v45_v3 = vld [vmem:[%s718_s2 + $0x8] sm:$0xff]  ;;  %484 = vmatprep.mubr.msk.f32.mxu1 %vm55_vm0, %v42_v2 }
   0x3   :  { %477 = vmatpush3.msra.mxu1 %v47_v0 }
   0x4   :  { %17 = vsyncpa [#allocation3], 0  ;;  %478 = vmatprep.subr.mxu1 %v46_v1  ;;  %v44_v4 = vld [vmem:[%s718_s2] sm:$0xff]  ;;  %v43_v5 = vld [vmem:[%s716_s0 + $0x8] sm:$0xff]  ;;  %vm295_vm1 = vcmask 523264   ;;  %s550_s25 = smov [#allocation2]  }
   0x5   :  { %479 = vmatpush3.msra.mxu1 %v46_v1  ;;  %v441_v7 = vld [vmem:[%s719_s3] ss:$0 sm:$0xff]  ;;  %v138_v12 = vld [vmem:[%s717_s1 + $0x8] sm:$0xff]  ;;  %v189_v27 = vld [vmem:[%s722_s6 + $0x18] sm:$0xff]  ;;  %s430_s26 = sshll.u32 %s550_s25, 4  ;;  %s431_s26 = int_to_ptr.vmem [resolvable:$true] %s430_s26 }
   0x6   :  { %480 = vmatprep.subr.mxu1 %v45_v3  ;;  %v137_v9 = vld [vmem:[%s717_s1] sm:$0xff]  ;;  %v188_v28 = vld [vmem:[%s722_s6 + $0x10] sm:$0xff]  ;;  %v187_v29 = vld [vmem:[%s722_s6 + $0x8] sm:$0xff]  ;;  %s528_s27 = scalar_lea.vmem %s431_s26, 256  ;;  %p533_p1 = scmp.lt.s32.totalorder %s431_s26, %s431_s26 }
   0x7   :  { %481 = vmatpush3.msra.mxu1 %v45_v3  ;;  %v186_v30 = vld [vmem:[%s722_s6] sm:$0xff]  ;;  %v287_v31 = vld [vmem:[%s724_s8 + $0x38] sm:$0xff]  ;;  %v286_v32 = vld [vmem:[%s724_s8 + $0x30] sm:$0xff]  ;;  %p529_p0 = scmp.ne.s32.totalorder %s431_s26, %s528_s27  ;;  %p534_p2 = scmp.lt.s32.totalorder %s528_s27, %s528_s27 }
   0x8   :  { %482 = vmatprep.subr.mxu1 %v44_v4  ;;  %498 = vmatprep.subr.mxu0 %v287_v31  ;;  %v285_v33 = vld [vmem:[%s724_s8 + $0x28] sm:$0xff]  ;;  %v284_v34 = vld [vmem:[%s724_s8 + $0x20] sm:$0xff]  ;;  %v283_v51 = vld [vmem:[%s724_s8 + $0x18] sm:$0xff] }
   0x9   :  { %483 = vmatpush3.msra.mxu1 %v44_v4  ;;  %499 = vmatpush3.msra.mxu0 %v287_v31  ;;  %v444_v42 = vld [vmem:[%s720_s4] ss:$0 sm:$0xff]  ;;  %v282_v52 = vld [vmem:[%s724_s8 + $0x10] sm:$0xff]  ;;  %v281_v53 = vld [vmem:[%s724_s8 + $0x8] sm:$0xff]  ;;  %p535_p3 = por %p534_p2, %p533_p1 }
   0xa   :  { %485 = vmatmul.mubr.msk.f32.vlgmr.msra.gmra.mxu1 %vm55_vm0, %v43_v5  ;;  %487 = vmatprep.subr.mxu1 %v189_v27  ;;  %v445_v44 = vld [vmem:[%s721_s5] ss:$0 sm:$0xff] }
   0xb   :  { %488 = vmatpush3.msra.mxu1 %v189_v27  ;;  %500 = vmatprep.subr.mxu0 %v286_v32  ;;  %v280_v54 = vld [vmem:[%s724_s8] sm:$0xff]  ;;  %p536_p4 = pnand %p535_p3, %p529_p0 }
   0xc   :  { %489 = vmatprep.subr.mxu1 %v188_v28  ;;  %501 = vmatpush3.msra.mxu0 %v286_v32  ;;  %v446_v55 = vld [vmem:[%s723_s7] ss:$0 sm:$0xff] }
   0xd   :  { %490 = vmatpush3.msra.mxu1 %v188_v28  ;;  %502 = vmatprep.subr.mxu0 %v285_v33  ;;  %v449_v62 = vld [vmem:[%s725_s9] ss:$0 sm:$0xff] }
   0xe   :  { %491 = vmatprep.subr.mxu1 %v187_v29  ;;  %503 = vmatpush3.msra.mxu0 %v285_v33  ;;  %v453_v27 = vld [vmem:[%s727_s11] ss:$0 sm:$0xff] }
   0xf   :  { %492 = vmatpush3.msra.mxu1 %v187_v29  ;;  %504 = vmatprep.subr.mxu0 %v284_v34 }
  0x10   :  { %493 = vmatprep.subr.mxu1 %v186_v30  ;;  %505 = vmatpush3.msra.mxu0 %v284_v34 }
  0x11   :  { %494 = vmatpush3.msra.mxu1 %v186_v30  ;;  %506 = vmatprep.subr.mxu0 %v283_v51 }
  0x12   :  { %507 = vmatpush3.msra.mxu0 %v283_v51 }
  0x13   :  { %508 = vmatprep.subr.mxu0 %v282_v52 }
  0x14   :  { %509 = vmatpush3.msra.mxu0 %v282_v52 }
  0x15   :  { %510 = vmatprep.subr.mxu0 %v281_v53 }
  0x16   :  { %511 = vmatpush3.msra.mxu0 %v281_v53 }
  0x17   :  { %512 = vmatprep.subr.mxu0 %v280_v54 }
  0x18   :  { %513 = vmatpush3.msra.mxu0 %v280_v54 }
  0xca   :  { %v486_v6 = vpop.f32.mrf.mxu1 }
  0xcb   :  { %v134_v10 = vadd.f32 %v486_v6, %v441_v7 }
  0xcc   :  { %v128_v8 = vpop.f32.mrf.mxu1 }
  0xcd   :  { %v129_v11 = vadd.f32 %v441_v7, %v128_v8  ;;  %v140_v15 = vadd.f32 %v138_v12, %v134_v10 }
  0xcf   :  { %v139_v13 = vadd.f32 %v137_v9, %v129_v11  ;;  %v146_v16 = vsel %vm55_vm0, %v140_v15, 0.0 }
  0xd1   :  { %v143_v14 = vsel %vm55_vm0, %v139_v13, 0.0 }
  0xd2   :  { %144 = vadd.xlane.f32.xlu0 %v143_v14 }
  0xd6   :  { %147 = vadd.xlane.f32.xlu0 %v146_v16 }
 0x15b   :  { %v145_v17 = vpop.xlane.xlu0 %144 }
 0x15c   :  { %v150_v18 = vmul.f32 0.03125, %v145_v17 }
 0x15e   :  { %v152_v19 = vsub.f32 %v139_v13, %v150_v18 }
 0x15f   :  { %v148_v20 = vpop.xlane.xlu0 %147 }
 0x160   :  { %v151_v21 = vmul.f32 0.03125, %v148_v20  ;;  %v154_v22 = vmul.f32 %v152_v19, %v152_v19 }
 0x162   :  { %v153_v23 = vsub.f32 %v140_v15, %v151_v21  ;;  %v156_v24 = vsel %vm55_vm0, %v154_v22, 0.0 }
 0x163   :  { %157 = vadd.xlane.f32.xlu1 %v156_v24  ;;  %v452_v24 = vld [vmem:[%s726_s10] ss:$0 sm:$0xff] }
 0x164   :  { %v155_v25 = vmul.f32 %v153_v23, %v153_v23 }
 0x166   :  { %v159_v26 = vsel %vm55_vm0, %v155_v25, 0.0 }
 0x167   :  { %160 = vadd.xlane.f32.xlu1 %v159_v26 }
 0x1ec   :  { %v158_v35 = vpop.xlane.xlu1 %157 }
 0x1ed   :  { %v162_v36 = vmul.f32 0.03125, %v158_v35 }
 0x1ef   :  { %v164_v37 = vadd.f32 1e-05, %v162_v36 }
 0x1f0   :  { %v161_v38 = vpop.xlane.xlu1 %160 }
 0x1f1   :  { %520 = vrsqrt.f32 %v164_v37  ;;  %v163_v39 = vmul.f32 0.03125, %v161_v38 }
 0x1f3   :  { %v165_v40 = vadd.f32 1e-05, %v163_v39 }
 0x1f5   :  { %522 = vrsqrt.f32 %v165_v40 }
 0x1fe   :  { %v521_v41 = vpop.eup %520 }
 0x1ff   :  { %v168_v43 = vmul.f32 %v521_v41, %v152_v19 }
 0x201   :  { %v176_v45 = vmul.f32 %v444_v42, %v168_v43 }
 0x202   :  { %v523_v46 = vpop.eup %522 }
 0x203   :  { %v169_v47 = vmul.f32 %v523_v46, %v153_v23  ;;  %v184_v48 = vadd.f32 %v445_v44, %v176_v45 }
 0x205   :  { %v177_v49 = vmul.f32 %v444_v42, %v169_v47  ;;  %495 = vmatprep.mubr.msk.f32.mxu1 %vm55_vm0, %v184_v48 }
 0x207   :  { %v185_v50 = vadd.f32 %v445_v44, %v177_v49 }
 0x209   :  { %496 = vmatmul.mubr.msk.f32.vlgmr.msra.gmra.mxu1 %vm55_vm0, %v185_v50 }
 0x2c9   :  { %v497_v56 = vpop.f32.mrf.mxu1 }
 0x2ca   :  { %v275_v57 = vadd.f32 %v497_v56, %v446_v55 }
 0x2cb   :  { %v269_v58 = vpop.f32.mrf.mxu1 }
 0x2cc   :  { %v270_v59 = vadd.f32 %v446_v55, %v269_v58  ;;  %v279_v61 = vmax.f32 %v275_v57, 0.0 }
 0x2ce   :  { %v278_v60 = vmax.f32 %v270_v59, 0.0 }
 0x2d0   :  { %514 = vmatprep.mubr.msk.f32.mxu0 %vm295_vm1, %v278_v60 }
 0x2d1   :  { %515 = vmatmul.mubr.msk.f32.vlgmr.msra.gmra.mxu0 %vm295_vm1, %v279_v61 }
 0x391   :  { %v516_v63 = vpop.f32.mrf.mxu0 }
 0x392   :  { %v374_v0 = vadd.f32 %v516_v63, %v449_v62 }
 0x393   :  { %v368_v1 = vpop.f32.mrf.mxu0 }
 0x394   :  { %v369_v2 = vadd.f32 %v449_v62, %v368_v1  ;;  %v378_v3 = vadd.f32 %v374_v0, %v185_v50 }
 0x396   :  { %v384_v4 = vsel %vm55_vm0, %v378_v3, 0.0  ;;  %v377_v5 = vadd.f32 %v369_v2, %v184_v48 }
 0x397   :  { %385 = vadd.xlane.f32.xlu1 %v384_v4 }
 0x398   :  { %v381_v6 = vsel %vm55_vm0, %v377_v5, 0.0 }
 0x399   :  { %382 = vadd.xlane.f32.xlu0 %v381_v6 }
 0x420   :  { %v386_v7 = vpop.xlane.xlu1 %385 }
 0x421   :  { %v388_v8 = vmul.f32 0.03125, %v386_v7 }
 0x422   :  { %v383_v9 = vpop.xlane.xlu0 %382 }
 0x423   :  { %v390_v10 = vsub.f32 %v378_v3, %v388_v8  ;;  %v387_v11 = vmul.f32 0.03125, %v383_v9 }
 0x425   :  { %v389_v12 = vsub.f32 %v377_v5, %v387_v11  ;;  %v392_v13 = vmul.f32 %v390_v10, %v390_v10 }
 0x427   :  { %v396_v14 = vsel %vm55_vm0, %v392_v13, 0.0  ;;  %v391_v15 = vmul.f32 %v389_v12, %v389_v12 }
 0x428   :  { %397 = vadd.xlane.f32.xlu1 %v396_v14 }
 0x429   :  { %v393_v16 = vsel %vm55_vm0, %v391_v15, 0.0 }
 0x42a   :  { %394 = vadd.xlane.f32.xlu0 %v393_v16 }
 0x4b1   :  { %v398_v17 = vpop.xlane.xlu1 %397 }
 0x4b2   :  { %v400_v18 = vmul.f32 0.03125, %v398_v17 }
 0x4b3   :  { %v395_v19 = vpop.xlane.xlu0 %394 }
 0x4b4   :  { %v402_v20 = vadd.f32 1e-05, %v400_v18  ;;  %v399_v21 = vmul.f32 0.03125, %v395_v19 }
 0x4b6   :  { %524 = vrsqrt.f32 %v402_v20  ;;  %v401_v22 = vadd.f32 1e-05, %v399_v21 }
 0x4b8   :  { %526 = vrsqrt.f32 %v401_v22 }
 0x4c3   :  { %v525_v23 = vpop.eup %524 }
 0x4c4   :  { %v406_v25 = vmul.f32 %v525_v23, %v390_v10 }
 0x4c5   :  { %v527_v26 = vpop.eup %526 }
 0x4c6   :  { %v405_v28 = vmul.f32 %v527_v26, %v389_v12  ;;  %v414_v29 = vmul.f32 %v452_v24, %v406_v25 }
 0x4c8   :  { %v413_v30 = vmul.f32 %v452_v24, %v405_v28  ;;  %v422_v31 = vadd.f32 %v453_v27, %v414_v29 }
 0x4ca   :  { %v421_v32 = vadd.f32 %v453_v27, %v413_v30  ;;  %424 = vst.msk [vmem:[#allocation2 + $0x8] sm:$0xff] %vm55_vm0, %v422_v31 }
 0x4cc   :  { %423 = vst.msk [vmem:[#allocation2] sm:$0xff] %vm55_vm0, %v421_v32 }
 0x4cd   :  { %539 = shalt.err (!%p536_p4)
}
 0x4ce   :  { %s551_s10 = smov 128   ;;  %s552_s11 = smov 8  }
 0x4cf   :  { %436 = dma.vmem_to_hbm [thread:$0]  %s431_s26, 256, %s728_s12, [#allocation3], %s551_s10, %s551_s10, %s552_s11  }
 0x4d0   :  { %548 = dma.done.wait [#allocation3], 256  }
 0x4d1   :  { %549 = vsyncadd [#allocation3], 4294967040 }
 0x4d2   :  { %440 = vsyncpa [#allocation3], 1 }

</bundles_post_ra>
